<compile_context>
chip_gen: v7x
topology: tpu7x:2x2x1
jax: 0.10.0
libtpu: 0.0.40
codegen_flags: <defaults>
</compile_context>

<pallas_src>
import functools

import jax
import jax.numpy as jnp
from jax import lax
from jax.experimental import pallas as pl
from jax.experimental.pallas import tpu as pltpu

SUBLANE = 8


# ---------------------------------------------------------------------------
# Fused Pallas kernel: interleaved GRU layers 1+2 -> fc3/relu/fc4/relu/fc5
# ---------------------------------------------------------------------------
def fused_gru_mlp_kernel(T, Bp, H,
                         x_ref,                               # (T*Bp, F)  time-major, flattened
                         wih1_ref, whh1_ref, bias1_ref, bhn1_ref,  # (F,3H) (H,3H) (1,3H) (1,H)
                         w2cat_ref, bias2_ref,                # (2H,4H) (1,4H)
                         w3_ref, b3_ref,                      # (H,Hs) (1,Hs)
                         w4_ref, b4_ref,                      # (Hs,Hs) (1,Hs)
                         w5_ref, b5_ref,                      # (Hs,O) (1,O)
                         out_ref):                            # (Bp, O)
    f32 = jnp.float32
    H2, H3 = 2 * H, 3 * H

    whh1 = whh1_ref[...]
    bhn1 = bhn1_ref[...]
    w2cat = w2cat_ref[...]
    bias2 = bias2_ref[...]

    # ---- Hoisted layer-1 input GEMM: one (T*Bp,F)@(F,3H) MXU op. ----
    # bias1 already contains b_ih1 with the r/z part of b_hh1 folded in.
    gi1 = jnp.dot(x_ref[...], wih1_ref[...],
                  preferred_element_type=f32) + bias1_ref[...]          # (T*Bp, 3H)

    h1 = jnp.zeros((Bp, H), f32)
    h2 = jnp.zeros((Bp, H), f32)

    # Fully unrolled (static T), layers interleaved: layer-2 step t consumes
    # h1_t immediately — no inter-layer buffer, no gi2 barrier.
    for t in range(T):
        # -- GRU layer 1, step t --
        gi_t = gi1[t * Bp:(t + 1) * Bp, :]                              # (Bp,3H): one sublane tile
        gh = jnp.dot(h1, whh1, preferred_element_type=f32)              # (Bp,3H)
        rz = jax.nn.sigmoid(gi_t[:, :H2] + gh[:, :H2])
        n = jnp.tanh(gi_t[:, H2:] + rz[:, :H] * (gh[:, H2:] + bhn1))
        h1 = n + rz[:, H:] * (h1 - n)                                   # == (1-z)*n + z*h

        # -- GRU layer 2, step t (single fused (Bp,2H)@(2H,4H) matmul) --
        # columns: [rz combined | gi_n (from h1_t) | gh_n (from h2)]
        g2 = jnp.dot(jnp.concatenate([h1, h2], axis=1), w2cat,
                     preferred_element_type=f32) + bias2                # (Bp, 4H) = (8,128)
        rz2 = jax.nn.sigmoid(g2[:, :H2])
        n2 = jnp.tanh(g2[:, H2:H3] + rz2[:, :H] * g2[:, H3:])
        h2 = n2 + rz2[:, H:] * (h2 - n2)

    # ---- MLP head: fc3 -> relu -> fc4 -> relu -> fc5 ----
    a = jnp.maximum(jnp.dot(h2, w3_ref[...], preferred_element_type=f32) + b3_ref[...], 0.0)
    a = jnp.maximum(jnp.dot(a, w4_ref[...], preferred_element_type=f32) + b4_ref[...], 0.0)
    out = jnp.dot(a, w5_ref[...], preferred_element_type=f32) + b5_ref[...]
    out_ref[...] = out.astype(out_ref.dtype)

    # TODO(synk): if T/B scale up, replace the full unroll with a
    # lax.fori_loop(..., unroll=True) writing h1 into a VMEM scratch ref and
    # time-chunk the inter-layer traffic to bound vreg/VMEM pressure.


# ---------------------------------------------------------------------------
# One-time parameter layout (run at init, NOT on the per-call jitted path)
# ---------------------------------------------------------------------------
def prepare_params(p):
    """Transpose/fold/concat PyTorch-layout GRU+MLP params into kernel layout."""
    H = p["w_hh1"].shape[1]
    f32 = jnp.float32

    # Layer 1: pre-transposed weights; r/z part of b_hh1 folded into b_ih1.
    wih1T = p["w_ih1"].T.astype(f32)                       # (F, 3H)
    whh1T = p["w_hh1"].T.astype(f32)                       # (H, 3H)
    bias1 = jnp.concatenate(
        [p["b_ih1"][:2 * H] + p["b_hh1"][:2 * H], p["b_ih1"][2 * H:]]
    ).reshape(1, -1).astype(f32)                           # (1, 3H)
    bhn1 = p["b_hh1"][2 * H:].reshape(1, -1).astype(f32)   # (1, H)

    # Layer 2: fused block matrix so one matmul per step yields
    #   [W_i_rz x + W_h_rz h  |  W_in x  |  W_hn h]   (keeps gi_n / gh_n separate).
    wih2T = p["w_ih2"].T.astype(f32)                       # (H, 3H)
    whh2T = p["w_hh2"].T.astype(f32)                       # (H, 3H)
    zHH = jnp.zeros((H, H), f32)
    top = jnp.concatenate([wih2T[:, :2 * H], wih2T[:, 2 * H:], zHH], axis=1)  # (H, 4H)
    bot = jnp.concatenate([whh2T[:, :2 * H], zHH, whh2T[:, 2 * H:]], axis=1)  # (H, 4H)
    w2cat = jnp.concatenate([top, bot], axis=0)            # (2H, 4H)
    bias2 = jnp.concatenate(
        [p["b_ih2"][:2 * H] + p["b_hh2"][:2 * H], p["b_ih2"][2 * H:], p["b_hh2"][2 * H:]]
    ).reshape(1, -1).astype(f32)                           # (1, 4H)

    # TODO(synk): on v6e/v7x the weight matrices could be cast to bf16 here
    # (MXU-native) while keeping gate math in f32; left in f32 for bit-safety.
    return dict(
        wih1T=wih1T, whh1T=whh1T, bias1=bias1, bhn1=bhn1,
        w2cat=w2cat, bias2=bias2,
        w3T=p["w3"].T.astype(f32), b3=p["b3"].reshape(1, -1).astype(f32),
        w4T=p["w4"].T.astype(f32), b4=p["b4"].reshape(1, -1).astype(f32),
        w5T=p["w5"].T.astype(f32), b5=p["b5"].reshape(1, -1).astype(f32),
    )


# ---------------------------------------------------------------------------
# Wrapper
# ---------------------------------------------------------------------------
_VMEM = pl.BlockSpec(memory_space=pltpu.MemorySpace.VMEM)


@jax.jit
def gru_model_forward(x, prepped):
    """x: (B, T, F) batch-first, like the PyTorch module. Returns (B, output_size)."""
    B, T, F = x.shape
    H = prepped["whh1T"].shape[0]
    O = prepped["w5T"].shape[1]
    Bp = max(SUBLANE, ((B + SUBLANE - 1) // SUBLANE) * SUBLANE)

    # Time-major + zero-pad batch to a whole sublane tile so every per-step
    # slice of gi1 and every hidden state is exactly (8, lanes) — layout no-ops.
    xt = jnp.transpose(x, (1, 0, 2))                       # (T, B, F)
    xt = jnp.pad(xt, ((0, 0), (0, Bp - B), (0, 0)))        # padded rows are zero (finite math)
    x2d = xt.reshape(T * Bp, F)

    args = (
        x2d,
        prepped["wih1T"], prepped["whh1T"], prepped["bias1"], prepped["bhn1"],
        prepped["w2cat"], prepped["bias2"],
        prepped["w3T"], prepped["b3"],
        prepped["w4T"], prepped["b4"],
        prepped["w5T"], prepped["b5"],
    )

    kernel = functools.partial(fused_gru_mlp_kernel, T, Bp, H)
    out = pl.pallas_call(
        kernel,
        out_shape=jax.ShapeDtypeStruct((Bp, O), jnp.float32),
        in_specs=[_VMEM] * len(args),
        out_specs=_VMEM,
    )(*args)
    # TODO(synk): for large batches add a leading batch grid axis with
    # dimension_semantics=("parallel",) so v7x's second TensorCore is used;
    # pointless at Bp=8.
    return out[:B]                                         # drop padded rows


# ---------------------------------------------------------------------------
# Pure-JAX reference (for correctness check)
# ---------------------------------------------------------------------------
def _gru_ref(x, w_ih, w_hh, b_ih, b_hh):
    B, T, _ = x.shape
    H = w_hh.shape[1]

    def cell(h, x_t):
        gi = x_t @ w_ih.T + b_ih
        gh = h @ w_hh.T + b_hh
        r = jax.nn.sigmoid(gi[:, :H] + gh[:, :H])
        z = jax.nn.sigmoid(gi[:, H:2 * H] + gh[:, H:2 * H])
        n = jnp.tanh(gi[:, 2 * H:] + r * gh[:, 2 * H:])
        h = (1.0 - z) * n + z * h
        return h, h

    h0 = jnp.zeros((B, H), jnp.float32)
    _, outs = lax.scan(cell, h0, jnp.transpose(x, (1, 0, 2)))
    return jnp.transpose(outs, (1, 0, 2))


def _ref_forward(x, p):
    out1 = _gru_ref(x, p["w_ih1"], p["w_hh1"], p["b_ih1"], p["b_hh1"])
    out2 = _gru_ref(out1, p["w_ih2"], p["w_hh2"], p["b_ih2"], p["b_hh2"])
    h = out2[:, -1, :]
    a = jnp.maximum(h @ p["w3"].T + p["b3"], 0.0)
    a = jnp.maximum(a @ p["w4"].T + p["b4"], 0.0)
    return a @ p["w5"].T + p["b5"]


# ---------------------------------------------------------------------------
# Main
# ---------------------------------------------------------------------------
if __name__ == "__main__":
    # Small shapes consistent with the module's forward.
    feature_dim, hidden_dim_gru, hidden_size, output_size = 8, 32, 32, 4
    batch, seq = 2, 8

    key = jax.random.PRNGKey(0)
    ks = jax.random.split(key, 16)

    def u(k, shape, fan):
        bound = 1.0 / jnp.sqrt(fan)
        return jax.random.uniform(k, shape, jnp.float32, -bound, bound)

    H = hidden_dim_gru
    params = {
        # GRU layer 1
        "w_ih1": u(ks[0], (3 * H, feature_dim), H),
        "w_hh1": u(ks[1], (3 * H, H), H),
        "b_ih1": u(ks[2], (3 * H,), H),
        "b_hh1": u(ks[3], (3 * H,), H),
        # GRU layer 2
        "w_ih2": u(ks[4], (3 * H, H), H),
        "w_hh2": u(ks[5], (3 * H, H), H),
        "b_ih2": u(ks[6], (3 * H,), H),
        "b_hh2": u(ks[7], (3 * H,), H),
        # MLP head
        "w3": u(ks[8], (hidden_size, H), H),
        "b3": u(ks[9], (hidden_size,), H),
        "w4": u(ks[10], (hidden_size, hidden_size), hidden_size),
        "b4": u(ks[11], (hidden_size,), hidden_size),
        "w5": u(ks[12], (output_size, hidden_size), hidden_size),
        "b5": u(ks[13], (output_size,), hidden_size),
    }

    x = jax.random.normal(ks[14], (batch, seq, feature_dim), jnp.float32)

    # One-time weight layout (outside the per-call path).
    prepped = jax.tree_util.tree_map(jax.block_until_ready, prepare_params(params))

    out = gru_model_forward(x, prepped)
    out = jax.block_until_ready(out)

    ref = jax.block_until_ready(_ref_forward(x, params))
    assert out.shape == (batch, output_size), out.shape
    assert jnp.allclose(out, ref, atol=1e-3, rtol=1e-3), (out, ref)

    print("KERNEL_OK")
</pallas_src>

<mosaic_0001>
module attributes {stable_mosaic.version = 11 : i64} {
  func.func @fused_gru_mlp_kernel(%arg0: memref<64x8xf32, #tpu.memory_space<vmem>>, %arg1: memref<8x96xf32, #tpu.memory_space<vmem>>, %arg2: memref<32x96xf32, #tpu.memory_space<vmem>>, %arg3: memref<1x96xf32, #tpu.memory_space<vmem>>, %arg4: memref<1x32xf32, #tpu.memory_space<vmem>>, %arg5: memref<64x128xf32, #tpu.memory_space<vmem>>, %arg6: memref<1x128xf32, #tpu.memory_space<vmem>>, %arg7: memref<32x32xf32, #tpu.memory_space<vmem>>, %arg8: memref<1x32xf32, #tpu.memory_space<vmem>>, %arg9: memref<32x32xf32, #tpu.memory_space<vmem>>, %arg10: memref<1x32xf32, #tpu.memory_space<vmem>>, %arg11: memref<32x4xf32, #tpu.memory_space<vmem>>, %arg12: memref<1x4xf32, #tpu.memory_space<vmem>>, %arg13: memref<8x4xf32, #tpu.memory_space<vmem>>) attributes {dimension_semantics = [], scalar_prefetch = 0 : i64, scratch_operands = 0 : i64, tpu.core_type = #tpu.core_type<tc>} {
    %c0 = arith.constant 0 : index
    %c0_0 = arith.constant 0 : index
    %0 = vector.load %arg2[%c0, %c0_0] : memref<32x96xf32, #tpu.memory_space<vmem>>, vector<32x96xf32>
    %c0_1 = arith.constant 0 : index
    %c0_2 = arith.constant 0 : index
    %1 = vector.load %arg4[%c0_1, %c0_2] : memref<1x32xf32, #tpu.memory_space<vmem>>, vector<1x32xf32>
    %c0_3 = arith.constant 0 : index
    %c0_4 = arith.constant 0 : index
    %2 = vector.load %arg5[%c0_3, %c0_4] : memref<64x128xf32, #tpu.memory_space<vmem>>, vector<64x128xf32>
    %c0_5 = arith.constant 0 : index
    %c0_6 = arith.constant 0 : index
    %3 = vector.load %arg6[%c0_5, %c0_6] : memref<1x128xf32, #tpu.memory_space<vmem>>, vector<1x128xf32>
    %c0_7 = arith.constant 0 : index
    %c0_8 = arith.constant 0 : index
    %4 = vector.load %arg0[%c0_7, %c0_8] : memref<64x8xf32, #tpu.memory_space<vmem>>, vector<64x8xf32>
    %c0_9 = arith.constant 0 : index
    %c0_10 = arith.constant 0 : index
    %5 = vector.load %arg1[%c0_9, %c0_10] : memref<8x96xf32, #tpu.memory_space<vmem>>, vector<8x96xf32>
    %cst = arith.constant dense<0.000000e+00> : vector<64x96xf32>
    %6 = tpu.matmul %4, %5, %cst {dimension_numbers = #tpu.dot_dimension_numbers<[1], [0], [0], [1], [0, 0, 1, 1], [], []>} : vector<64x8xf32>, vector<8x96xf32>, vector<64x96xf32> -> vector<64x96xf32>
    %c0_11 = arith.constant 0 : index
    %c0_12 = arith.constant 0 : index
    %7 = vector.load %arg3[%c0_11, %c0_12] : memref<1x96xf32, #tpu.memory_space<vmem>>, vector<1x96xf32>
    %8 = vector.broadcast %7 : vector<1x96xf32> to vector<64x96xf32>
    %9 = arith.addf %6, %8 : vector<64x96xf32>
    %cst_13 = arith.constant 0.000000e+00 : f32
    %10 = vector.broadcast %cst_13 : f32 to vector<8x32xf32>
    %cst_14 = arith.constant 0.000000e+00 : f32
    %11 = vector.broadcast %cst_14 : f32 to vector<8x32xf32>
    %12 = vector.extract_strided_slice %9 {offsets = [0, 0], sizes = [8, 96], strides = [1, 1]} : vector<64x96xf32> to vector<8x96xf32>
    %cst_15 = arith.constant dense<0.000000e+00> : vector<8x96xf32>
    %13 = tpu.matmul %10, %0, %cst_15 {dimension_numbers = #tpu.dot_dimension_numbers<[1], [0], [0], [1], [0, 0, 1, 1], [], []>} : vector<8x32xf32>, vector<32x96xf32>, vector<8x96xf32> -> vector<8x96xf32>
    %14 = vector.extract_strided_slice %12 {offsets = [0, 0], sizes = [8, 64], strides = [1, 1]} : vector<8x96xf32> to vector<8x64xf32>
    %15 = vector.extract_strided_slice %13 {offsets = [0, 0], sizes = [8, 64], strides = [1, 1]} : vector<8x96xf32> to vector<8x64xf32>
    %16 = arith.addf %14, %15 : vector<8x64xf32>
    %17 = arith.negf %16 : vector<8x64xf32>
    %18 = math.exp %17 : vector<8x64xf32>
    %cst_16 = arith.constant 1.000000e+00 : f32
    %19 = vector.broadcast %cst_16 : f32 to vector<8x64xf32>
    %20 = arith.addf %19, %18 : vector<8x64xf32>
    %21 = arith.divf %19, %20 : vector<8x64xf32>
    %22 = vector.extract_strided_slice %12 {offsets = [0, 64], sizes = [8, 32], strides = [1, 1]} : vector<8x96xf32> to vector<8x32xf32>
    %23 = vector.extract_strided_slice %21 {offsets = [0, 0], sizes = [8, 32], strides = [1, 1]} : vector<8x64xf32> to vector<8x32xf32>
    %24 = vector.extract_strided_slice %13 {offsets = [0, 64], sizes = [8, 32], strides = [1, 1]} : vector<8x96xf32> to vector<8x32xf32>
    %25 = vector.broadcast %1 : vector<1x32xf32> to vector<8x32xf32>
    %26 = arith.addf %24, %25 : vector<8x32xf32>
    %27 = arith.mulf %23, %26 : vector<8x32xf32>
    %28 = arith.addf %22, %27 : vector<8x32xf32>
    %29 = math.tanh %28 : vector<8x32xf32>
    %30 = vector.extract_strided_slice %21 {offsets = [0, 32], sizes = [8, 32], strides = [1, 1]} : vector<8x64xf32> to vector<8x32xf32>
    %31 = arith.subf %10, %29 : vector<8x32xf32>
    %32 = arith.mulf %30, %31 : vector<8x32xf32>
    %33 = arith.addf %29, %32 : vector<8x32xf32>
    %34 = tpu.concatenate %33, %11 in 1 : vector<8x32xf32>, vector<8x32xf32> -> vector<8x64xf32>
    %cst_17 = arith.constant dense<0.000000e+00> : vector<8x128xf32>
    %35 = tpu.matmul %34, %2, %cst_17 {dimension_numbers = #tpu.dot_dimension_numbers<[1], [0], [0], [1], [0, 0, 1, 1], [], []>} : vector<8x64xf32>, vector<64x128xf32>, vector<8x128xf32> -> vector<8x128xf32>
    %36 = vector.broadcast %3 : vector<1x128xf32> to vector<8x128xf32>
    %37 = arith.addf %35, %36 : vector<8x128xf32>
    %38 = vector.extract_strided_slice %37 {offsets = [0, 0], sizes = [8, 64], strides = [1, 1]} : vector<8x128xf32> to vector<8x64xf32>
    %39 = arith.negf %38 : vector<8x64xf32>
    %40 = math.exp %39 : vector<8x64xf32>
    %cst_18 = arith.constant 1.000000e+00 : f32
    %41 = vector.broadcast %cst_18 : f32 to vector<8x64xf32>
    %42 = arith.addf %41, %40 : vector<8x64xf32>
    %43 = arith.divf %41, %42 : vector<8x64xf32>
    %44 = vector.extract_strided_slice %37 {offsets = [0, 64], sizes = [8, 32], strides = [1, 1]} : vector<8x128xf32> to vector<8x32xf32>
    %45 = vector.extract_strided_slice %43 {offsets = [0, 0], sizes = [8, 32], strides = [1, 1]} : vector<8x64xf32> to vector<8x32xf32>
    %46 = vector.extract_strided_slice %37 {offsets = [0, 96], sizes = [8, 32], strides = [1, 1]} : vector<8x128xf32> to vector<8x32xf32>
    %47 = arith.mulf %45, %46 : vector<8x32xf32>
    %48 = arith.addf %44, %47 : vector<8x32xf32>
    %49 = math.tanh %48 : vector<8x32xf32>
    %50 = vector.extract_strided_slice %43 {offsets = [0, 32], sizes = [8, 32], strides = [1, 1]} : vector<8x64xf32> to vector<8x32xf32>
    %51 = arith.subf %11, %49 : vector<8x32xf32>
    %52 = arith.mulf %50, %51 : vector<8x32xf32>
    %53 = arith.addf %49, %52 : vector<8x32xf32>
    %54 = vector.extract_strided_slice %9 {offsets = [8, 0], sizes = [8, 96], strides = [1, 1]} : vector<64x96xf32> to vector<8x96xf32>
    %cst_19 = arith.constant dense<0.000000e+00> : vector<8x96xf32>
    %55 = tpu.matmul %33, %0, %cst_19 {dimension_numbers = #tpu.dot_dimension_numbers<[1], [0], [0], [1], [0, 0, 1, 1], [], []>} : vector<8x32xf32>, vector<32x96xf32>, vector<8x96xf32> -> vector<8x96xf32>
    %56 = vector.extract_strided_slice %54 {offsets = [0, 0], sizes = [8, 64], strides = [1, 1]} : vector<8x96xf32> to vector<8x64xf32>
    %57 = vector.extract_strided_slice %55 {offsets = [0, 0], sizes = [8, 64], strides = [1, 1]} : vector<8x96xf32> to vector<8x64xf32>
    %58 = arith.addf %56, %57 : vector<8x64xf32>
    %59 = arith.negf %58 : vector<8x64xf32>
    %60 = math.exp %59 : vector<8x64xf32>
    %cst_20 = arith.constant 1.000000e+00 : f32
    %61 = vector.broadcast %cst_20 : f32 to vector<8x64xf32>
    %62 = arith.addf %61, %60 : vector<8x64xf32>
    %63 = arith.divf %61, %62 : vector<8x64xf32>
    %64 = vector.extract_strided_slice %54 {offsets = [0, 64], sizes = [8, 32], strides = [1, 1]} : vector<8x96xf32> to vector<8x32xf32>
    %65 = vector.extract_strided_slice %63 {offsets = [0, 0], sizes = [8, 32], strides = [1, 1]} : vector<8x64xf32> to vector<8x32xf32>
    %66 = vector.extract_strided_slice %55 {offsets = [0, 64], sizes = [8, 32], strides = [1, 1]} : vector<8x96xf32> to vector<8x32xf32>
    %67 = vector.broadcast %1 : vector<1x32xf32> to vector<8x32xf32>
    %68 = arith.addf %66, %67 : vector<8x32xf32>
    %69 = arith.mulf %65, %68 : vector<8x32xf32>
    %70 = arith.addf %64, %69 : vector<8x32xf32>
    %71 = math.tanh %70 : vector<8x32xf32>
    %72 = vector.extract_strided_slice %63 {offsets = [0, 32], sizes = [8, 32], strides = [1, 1]} : vector<8x64xf32> to vector<8x32xf32>
    %73 = arith.subf %33, %71 : vector<8x32xf32>
    %74 = arith.mulf %72, %73 : vector<8x32xf32>
    %75 = arith.addf %71, %74 : vector<8x32xf32>
    %76 = tpu.concatenate %75, %53 in 1 : vector<8x32xf32>, vector<8x32xf32> -> vector<8x64xf32>
    %cst_21 = arith.constant dense<0.000000e+00> : vector<8x128xf32>
    %77 = tpu.matmul %76, %2, %cst_21 {dimension_numbers = #tpu.dot_dimension_numbers<[1], [0], [0], [1], [0, 0, 1, 1], [], []>} : vector<8x64xf32>, vector<64x128xf32>, vector<8x128xf32> -> vector<8x128xf32>
    %78 = vector.broadcast %3 : vector<1x128xf32> to vector<8x128xf32>
    %79 = arith.addf %77, %78 : vector<8x128xf32>
    %80 = vector.extract_strided_slice %79 {offsets = [0, 0], sizes = [8, 64], strides = [1, 1]} : vector<8x128xf32> to vector<8x64xf32>
    %81 = arith.negf %80 : vector<8x64xf32>
    %82 = math.exp %81 : vector<8x64xf32>
    %cst_22 = arith.constant 1.000000e+00 : f32
    %83 = vector.broadcast %cst_22 : f32 to vector<8x64xf32>
    %84 = arith.addf %83, %82 : vector<8x64xf32>
    %85 = arith.divf %83, %84 : vector<8x64xf32>
    %86 = vector.extract_strided_slice %79 {offsets = [0, 64], sizes = [8, 32], strides = [1, 1]} : vector<8x128xf32> to vector<8x32xf32>
    %87 = vector.extract_strided_slice %85 {offsets = [0, 0], sizes = [8, 32], strides = [1, 1]} : vector<8x64xf32> to vector<8x32xf32>
    %88 = vector.extract_strided_slice %79 {offsets = [0, 96], sizes = [8, 32], strides = [1, 1]} : vector<8x128xf32> to vector<8x32xf32>
    %89 = arith.mulf %87, %88 : vector<8x32xf32>
    %90 = arith.addf %86, %89 : vector<8x32xf32>
    %91 = math.tanh %90 : vector<8x32xf32>
    %92 = vector.extract_strided_slice %85 {offsets = [0, 32], sizes = [8, 32], strides = [1, 1]} : vector<8x64xf32> to vector<8x32xf32>
    %93 = arith.subf %53, %91 : vector<8x32xf32>
    %94 = arith.mulf %92, %93 : vector<8x32xf32>
    %95 = arith.addf %91, %94 : vector<8x32xf32>
    %96 = vector.extract_strided_slice %9 {offsets = [16, 0], sizes = [8, 96], strides = [1, 1]} : vector<64x96xf32> to vector<8x96xf32>
    %cst_23 = arith.constant dense<0.000000e+00> : vector<8x96xf32>
    %97 = tpu.matmul %75, %0, %cst_23 {dimension_numbers = #tpu.dot_dimension_numbers<[1], [0], [0], [1], [0, 0, 1, 1], [], []>} : vector<8x32xf32>, vector<32x96xf32>, vector<8x96xf32> -> vector<8x96xf32>
    %98 = vector.extract_strided_slice %96 {offsets = [0, 0], sizes = [8, 64], strides = [1, 1]} : vector<8x96xf32> to vector<8x64xf32>
    %99 = vector.extract_strided_slice %97 {offsets = [0, 0], sizes = [8, 64], strides = [1, 1]} : vector<8x96xf32> to vector<8x64xf32>
    %100 = arith.addf %98, %99 : vector<8x64xf32>
    %101 = arith.negf %100 : vector<8x64xf32>
    %102 = math.exp %101 : vector<8x64xf32>
    %cst_24 = arith.constant 1.000000e+00 : f32
    %103 = vector.broadcast %cst_24 : f32 to vector<8x64xf32>
    %104 = arith.addf %103, %102 : vector<8x64xf32>
    %105 = arith.divf %103, %104 : vector<8x64xf32>
    %106 = vector.extract_strided_slice %96 {offsets = [0, 64], sizes = [8, 32], strides = [1, 1]} : vector<8x96xf32> to vector<8x32xf32>
    %107 = vector.extract_strided_slice %105 {offsets = [0, 0], sizes = [8, 32], strides = [1, 1]} : vector<8x64xf32> to vector<8x32xf32>
    %108 = vector.extract_strided_slice %97 {offsets = [0, 64], sizes = [8, 32], strides = [1, 1]} : vector<8x96xf32> to vector<8x32xf32>
    %109 = vector.broadcast %1 : vector<1x32xf32> to vector<8x32xf32>
    %110 = arith.addf %108, %109 : vector<8x32xf32>
    %111 = arith.mulf %107, %110 : vector<8x32xf32>
    %112 = arith.addf %106, %111 : vector<8x32xf32>
    %113 = math.tanh %112 : vector<8x32xf32>
    %114 = vector.extract_strided_slice %105 {offsets = [0, 32], sizes = [8, 32], strides = [1, 1]} : vector<8x64xf32> to vector<8x32xf32>
    %115 = arith.subf %75, %113 : vector<8x32xf32>
    %116 = arith.mulf %114, %115 : vector<8x32xf32>
    %117 = arith.addf %113, %116 : vector<8x32xf32>
    %118 = tpu.concatenate %117, %95 in 1 : vector<8x32xf32>, vector<8x32xf32> -> vector<8x64xf32>
    %cst_25 = arith.constant dense<0.000000e+00> : vector<8x128xf32>
    %119 = tpu.matmul %118, %2, %cst_25 {dimension_numbers = #tpu.dot_dimension_numbers<[1], [0], [0], [1], [0, 0, 1, 1], [], []>} : vector<8x64xf32>, vector<64x128xf32>, vector<8x128xf32> -> vector<8x128xf32>
    %120 = vector.broadcast %3 : vector<1x128xf32> to vector<8x128xf32>
    %121 = arith.addf %119, %120 : vector<8x128xf32>
    %122 = vector.extract_strided_slice %121 {offsets = [0, 0], sizes = [8, 64], strides = [1, 1]} : vector<8x128xf32> to vector<8x64xf32>
    %123 = arith.negf %122 : vector<8x64xf32>
    %124 = math.exp %123 : vector<8x64xf32>
    %cst_26 = arith.constant 1.000000e+00 : f32
    %125 = vector.broadcast %cst_26 : f32 to vector<8x64xf32>
    %126 = arith.addf %125, %124 : vector<8x64xf32>
    %127 = arith.divf %125, %126 : vector<8x64xf32>
    %128 = vector.extract_strided_slice %121 {offsets = [0, 64], sizes = [8, 32], strides = [1, 1]} : vector<8x128xf32> to vector<8x32xf32>
    %129 = vector.extract_strided_slice %127 {offsets = [0, 0], sizes = [8, 32], strides = [1, 1]} : vector<8x64xf32> to vector<8x32xf32>
    %130 = vector.extract_strided_slice %121 {offsets = [0, 96], sizes = [8, 32], strides = [1, 1]} : vector<8x128xf32> to vector<8x32xf32>
    %131 = arith.mulf %129, %130 : vector<8x32xf32>
    %132 = arith.addf %128, %131 : vector<8x32xf32>
    %133 = math.tanh %132 : vector<8x32xf32>
    %134 = vector.extract_strided_slice %127 {offsets = [0, 32], sizes = [8, 32], strides = [1, 1]} : vector<8x64xf32> to vector<8x32xf32>
    %135 = arith.subf %95, %133 : vector<8x32xf32>
    %136 = arith.mulf %134, %135 : vector<8x32xf32>
    %137 = arith.addf %133, %136 : vector<8x32xf32>
    %138 = vector.extract_strided_slice %9 {offsets = [24, 0], sizes = [8, 96], strides = [1, 1]} : vector<64x96xf32> to vector<8x96xf32>
    %cst_27 = arith.constant dense<0.000000e+00> : vector<8x96xf32>
    %139 = tpu.matmul %117, %0, %cst_27 {dimension_numbers = #tpu.dot_dimension_numbers<[1], [0], [0], [1], [0, 0, 1, 1], [], []>} : vector<8x32xf32>, vector<32x96xf32>, vector<8x96xf32> -> vector<8x96xf32>
    %140 = vector.extract_strided_slice %138 {offsets = [0, 0], sizes = [8, 64], strides = [1, 1]} : vector<8x96xf32> to vector<8x64xf32>
    %141 = vector.extract_strided_slice %139 {offsets = [0, 0], sizes = [8, 64], strides = [1, 1]} : vector<8x96xf32> to vector<8x64xf32>
    %142 = arith.addf %140, %141 : vector<8x64xf32>
    %143 = arith.negf %142 : vector<8x64xf32>
    %144 = math.exp %143 : vector<8x64xf32>
    %cst_28 = arith.constant 1.000000e+00 : f32
    %145 = vector.broadcast %cst_28 : f32 to vector<8x64xf32>
    %146 = arith.addf %145, %144 : vector<8x64xf32>
    %147 = arith.divf %145, %146 : vector<8x64xf32>
    %148 = vector.extract_strided_slice %138 {offsets = [0, 64], sizes = [8, 32], strides = [1, 1]} : vector<8x96xf32> to vector<8x32xf32>
    %149 = vector.extract_strided_slice %147 {offsets = [0, 0], sizes = [8, 32], strides = [1, 1]} : vector<8x64xf32> to vector<8x32xf32>
    %150 = vector.extract_strided_slice %139 {offsets = [0, 64], sizes = [8, 32], strides = [1, 1]} : vector<8x96xf32> to vector<8x32xf32>
    %151 = vector.broadcast %1 : vector<1x32xf32> to vector<8x32xf32>
    %152 = arith.addf %150, %151 : vector<8x32xf32>
    %153 = arith.mulf %149, %152 : vector<8x32xf32>
    %154 = arith.addf %148, %153 : vector<8x32xf32>
    %155 = math.tanh %154 : vector<8x32xf32>
    %156 = vector.extract_strided_slice %147 {offsets = [0, 32], sizes = [8, 32], strides = [1, 1]} : vector<8x64xf32> to vector<8x32xf32>
    %157 = arith.subf %117, %155 : vector<8x32xf32>
    %158 = arith.mulf %156, %157 : vector<8x32xf32>
    %159 = arith.addf %155, %158 : vector<8x32xf32>
    %160 = tpu.concatenate %159, %137 in 1 : vector<8x32xf32>, vector<8x32xf32> -> vector<8x64xf32>
    %cst_29 = arith.constant dense<0.000000e+00> : vector<8x128xf32>
    %161 = tpu.matmul %160, %2, %cst_29 {dimension_numbers = #tpu.dot_dimension_numbers<[1], [0], [0], [1], [0, 0, 1, 1], [], []>} : vector<8x64xf32>, vector<64x128xf32>, vector<8x128xf32> -> vector<8x128xf32>
    %162 = vector.broadcast %3 : vector<1x128xf32> to vector<8x128xf32>
    %163 = arith.addf %161, %162 : vector<8x128xf32>
    %164 = vector.extract_strided_slice %163 {offsets = [0, 0], sizes = [8, 64], strides = [1, 1]} : vector<8x128xf32> to vector<8x64xf32>
    %165 = arith.negf %164 : vector<8x64xf32>
    %166 = math.exp %165 : vector<8x64xf32>
    %cst_30 = arith.constant 1.000000e+00 : f32
    %167 = vector.broadcast %cst_30 : f32 to vector<8x64xf32>
    %168 = arith.addf %167, %166 : vector<8x64xf32>
    %169 = arith.divf %167, %168 : vector<8x64xf32>
    %170 = vector.extract_strided_slice %163 {offsets = [0, 64], sizes = [8, 32], strides = [1, 1]} : vector<8x128xf32> to vector<8x32xf32>
    %171 = vector.extract_strided_slice %169 {offsets = [0, 0], sizes = [8, 32], strides = [1, 1]} : vector<8x64xf32> to vector<8x32xf32>
    %172 = vector.extract_strided_slice %163 {offsets = [0, 96], sizes = [8, 32], strides = [1, 1]} : vector<8x128xf32> to vector<8x32xf32>
    %173 = arith.mulf %171, %172 : vector<8x32xf32>
    %174 = arith.addf %170, %173 : vector<8x32xf32>
    %175 = math.tanh %174 : vector<8x32xf32>
    %176 = vector.extract_strided_slice %169 {offsets = [0, 32], sizes = [8, 32], strides = [1, 1]} : vector<8x64xf32> to vector<8x32xf32>
    %177 = arith.subf %137, %175 : vector<8x32xf32>
    %178 = arith.mulf %176, %177 : vector<8x32xf32>
    %179 = arith.addf %175, %178 : vector<8x32xf32>
    %180 = vector.extract_strided_slice %9 {offsets = [32, 0], sizes = [8, 96], strides = [1, 1]} : vector<64x96xf32> to vector<8x96xf32>
    %cst_31 = arith.constant dense<0.000000e+00> : vector<8x96xf32>
    %181 = tpu.matmul %159, %0, %cst_31 {dimension_numbers = #tpu.dot_dimension_numbers<[1], [0], [0], [1], [0, 0, 1, 1], [], []>} : vector<8x32xf32>, vector<32x96xf32>, vector<8x96xf32> -> vector<8x96xf32>
    %182 = vector.extract_strided_slice %180 {offsets = [0, 0], sizes = [8, 64], strides = [1, 1]} : vector<8x96xf32> to vector<8x64xf32>
    %183 = vector.extract_strided_slice %181 {offsets = [0, 0], sizes = [8, 64], strides = [1, 1]} : vector<8x96xf32> to vector<8x64xf32>
    %184 = arith.addf %182, %183 : vector<8x64xf32>
    %185 = arith.negf %184 : vector<8x64xf32>
    %186 = math.exp %185 : vector<8x64xf32>
    %cst_32 = arith.constant 1.000000e+00 : f32
    %187 = vector.broadcast %cst_32 : f32 to vector<8x64xf32>
    %188 = arith.addf %187, %186 : vector<8x64xf32>
    %189 = arith.divf %187, %188 : vector<8x64xf32>
    %190 = vector.extract_strided_slice %180 {offsets = [0, 64], sizes = [8, 32], strides = [1, 1]} : vector<8x96xf32> to vector<8x32xf32>
    %191 = vector.extract_strided_slice %189 {offsets = [0, 0], sizes = [8, 32], strides = [1, 1]} : vector<8x64xf32> to vector<8x32xf32>
    %192 = vector.extract_strided_slice %181 {offsets = [0, 64], sizes = [8, 32], strides = [1, 1]} : vector<8x96xf32> to vector<8x32xf32>
    %193 = vector.broadcast %1 : vector<1x32xf32> to vector<8x32xf32>
    %194 = arith.addf %192, %193 : vector<8x32xf32>
    %195 = arith.mulf %191, %194 : vector<8x32xf32>
    %196 = arith.addf %190, %195 : vector<8x32xf32>
    %197 = math.tanh %196 : vector<8x32xf32>
    %198 = vector.extract_strided_slice %189 {offsets = [0, 32], sizes = [8, 32], strides = [1, 1]} : vector<8x64xf32> to vector<8x32xf32>
    %199 = arith.subf %159, %197 : vector<8x32xf32>
    %200 = arith.mulf %198, %199 : vector<8x32xf32>
    %201 = arith.addf %197, %200 : vector<8x32xf32>
    %202 = tpu.concatenate %201, %179 in 1 : vector<8x32xf32>, vector<8x32xf32> -> vector<8x64xf32>
    %cst_33 = arith.constant dense<0.000000e+00> : vector<8x128xf32>
    %203 = tpu.matmul %202, %2, %cst_33 {dimension_numbers = #tpu.dot_dimension_numbers<[1], [0], [0], [1], [0, 0, 1, 1], [], []>} : vector<8x64xf32>, vector<64x128xf32>, vector<8x128xf32> -> vector<8x128xf32>
    %204 = vector.broadcast %3 : vector<1x128xf32> to vector<8x128xf32>
    %205 = arith.addf %203, %204 : vector<8x128xf32>
    %206 = vector.extract_strided_slice %205 {offsets = [0, 0], sizes = [8, 64], strides = [1, 1]} : vector<8x128xf32> to vector<8x64xf32>
    %207 = arith.negf %206 : vector<8x64xf32>
    %208 = math.exp %207 : vector<8x64xf32>
    %cst_34 = arith.constant 1.000000e+00 : f32
    %209 = vector.broadcast %cst_34 : f32 to vector<8x64xf32>
    %210 = arith.addf %209, %208 : vector<8x64xf32>
    %211 = arith.divf %209, %210 : vector<8x64xf32>
    %212 = vector.extract_strided_slice %205 {offsets = [0, 64], sizes = [8, 32], strides = [1, 1]} : vector<8x128xf32> to vector<8x32xf32>
    %213 = vector.extract_strided_slice %211 {offsets = [0, 0], sizes = [8, 32], strides = [1, 1]} : vector<8x64xf32> to vector<8x32xf32>
    %214 = vector.extract_strided_slice %205 {offsets = [0, 96], sizes = [8, 32], strides = [1, 1]} : vector<8x128xf32> to vector<8x32xf32>
    %215 = arith.mulf %213, %214 : vector<8x32xf32>
    %216 = arith.addf %212, %215 : vector<8x32xf32>
    %217 = math.tanh %216 : vector<8x32xf32>
    %218 = vector.extract_strided_slice %211 {offsets = [0, 32], sizes = [8, 32], strides = [1, 1]} : vector<8x64xf32> to vector<8x32xf32>
    %219 = arith.subf %179, %217 : vector<8x32xf32>
    %220 = arith.mulf %218, %219 : vector<8x32xf32>
    %221 = arith.addf %217, %220 : vector<8x32xf32>
    %222 = vector.extract_strided_slice %9 {offsets = [40, 0], sizes = [8, 96], strides = [1, 1]} : vector<64x96xf32> to vector<8x96xf32>
    %cst_35 = arith.constant dense<0.000000e+00> : vector<8x96xf32>
    %223 = tpu.matmul %201, %0, %cst_35 {dimension_numbers = #tpu.dot_dimension_numbers<[1], [0], [0], [1], [0, 0, 1, 1], [], []>} : vector<8x32xf32>, vector<32x96xf32>, vector<8x96xf32> -> vector<8x96xf32>
    %224 = vector.extract_strided_slice %222 {offsets = [0, 0], sizes = [8, 64], strides = [1, 1]} : vector<8x96xf32> to vector<8x64xf32>
    %225 = vector.extract_strided_slice %223 {offsets = [0, 0], sizes = [8, 64], strides = [1, 1]} : vector<8x96xf32> to vector<8x64xf32>
    %226 = arith.addf %224, %225 : vector<8x64xf32>
    %227 = arith.negf %226 : vector<8x64xf32>
    %228 = math.exp %227 : vector<8x64xf32>
    %cst_36 = arith.constant 1.000000e+00 : f32
    %229 = vector.broadcast %cst_36 : f32 to vector<8x64xf32>
    %230 = arith.addf %229, %228 : vector<8x64xf32>
    %231 = arith.divf %229, %230 : vector<8x64xf32>
    %232 = vector.extract_strided_slice %222 {offsets = [0, 64], sizes = [8, 32], strides = [1, 1]} : vector<8x96xf32> to vector<8x32xf32>
    %233 = vector.extract_strided_slice %231 {offsets = [0, 0], sizes = [8, 32], strides = [1, 1]} : vector<8x64xf32> to vector<8x32xf32>
    %234 = vector.extract_strided_slice %223 {offsets = [0, 64], sizes = [8, 32], strides = [1, 1]} : vector<8x96xf32> to vector<8x32xf32>
    %235 = vector.broadcast %1 : vector<1x32xf32> to vector<8x32xf32>
    %236 = arith.addf %234, %235 : vector<8x32xf32>
    %237 = arith.mulf %233, %236 : vector<8x32xf32>
    %238 = arith.addf %232, %237 : vector<8x32xf32>
    %239 = math.tanh %238 : vector<8x32xf32>
    %240 = vector.extract_strided_slice %231 {offsets = [0, 32], sizes = [8, 32], strides = [1, 1]} : vector<8x64xf32> to vector<8x32xf32>
    %241 = arith.subf %201, %239 : vector<8x32xf32>
    %242 = arith.mulf %240, %241 : vector<8x32xf32>
    %243 = arith.addf %239, %242 : vector<8x32xf32>
    %244 = tpu.concatenate %243, %221 in 1 : vector<8x32xf32>, vector<8x32xf32> -> vector<8x64xf32>
    %cst_37 = arith.constant dense<0.000000e+00> : vector<8x128xf32>
    %245 = tpu.matmul %244, %2, %cst_37 {dimension_numbers = #tpu.dot_dimension_numbers<[1], [0], [0], [1], [0, 0, 1, 1], [], []>} : vector<8x64xf32>, vector<64x128xf32>, vector<8x128xf32> -> vector<8x128xf32>
    %246 = vector.broadcast %3 : vector<1x128xf32> to vector<8x128xf32>
    %247 = arith.addf %245, %246 : vector<8x128xf32>
    %248 = vector.extract_strided_slice %247 {offsets = [0, 0], sizes = [8, 64], strides = [1, 1]} : vector<8x128xf32> to vector<8x64xf32>
    %249 = arith.negf %248 : vector<8x64xf32>
    %250 = math.exp %249 : vector<8x64xf32>
    %cst_38 = arith.constant 1.000000e+00 : f32
    %251 = vector.broadcast %cst_38 : f32 to vector<8x64xf32>
    %252 = arith.addf %251, %250 : vector<8x64xf32>
    %253 = arith.divf %251, %252 : vector<8x64xf32>
    %254 = vector.extract_strided_slice %247 {offsets = [0, 64], sizes = [8, 32], strides = [1, 1]} : vector<8x128xf32> to vector<8x32xf32>
    %255 = vector.extract_strided_slice %253 {offsets = [0, 0], sizes = [8, 32], strides = [1, 1]} : vector<8x64xf32> to vector<8x32xf32>
    %256 = vector.extract_strided_slice %247 {offsets = [0, 96], sizes = [8, 32], strides = [1, 1]} : vector<8x128xf32> to vector<8x32xf32>
    %257 = arith.mulf %255, %256 : vector<8x32xf32>
    %258 = arith.addf %254, %257 : vector<8x32xf32>
    %259 = math.tanh %258 : vector<8x32xf32>
    %260 = vector.extract_strided_slice %253 {offsets = [0, 32], sizes = [8, 32], strides = [1, 1]} : vector<8x64xf32> to vector<8x32xf32>
    %261 = arith.subf %221, %259 : vector<8x32xf32>
    %262 = arith.mulf %260, %261 : vector<8x32xf32>
    %263 = arith.addf %259, %262 : vector<8x32xf32>
    %264 = vector.extract_strided_slice %9 {offsets = [48, 0], sizes = [8, 96], strides = [1, 1]} : vector<64x96xf32> to vector<8x96xf32>
    %cst_39 = arith.constant dense<0.000000e+00> : vector<8x96xf32>
    %265 = tpu.matmul %243, %0, %cst_39 {dimension_numbers = #tpu.dot_dimension_numbers<[1], [0], [0], [1], [0, 0, 1, 1], [], []>} : vector<8x32xf32>, vector<32x96xf32>, vector<8x96xf32> -> vector<8x96xf32>
    %266 = vector.extract_strided_slice %264 {offsets = [0, 0], sizes = [8, 64], strides = [1, 1]} : vector<8x96xf32> to vector<8x64xf32>
    %267 = vector.extract_strided_slice %265 {offsets = [0, 0], sizes = [8, 64], strides = [1, 1]} : vector<8x96xf32> to vector<8x64xf32>
    %268 = arith.addf %266, %267 : vector<8x64xf32>
    %269 = arith.negf %268 : vector<8x64xf32>
    %270 = math.exp %269 : vector<8x64xf32>
    %cst_40 = arith.constant 1.000000e+00 : f32
    %271 = vector.broadcast %cst_40 : f32 to vector<8x64xf32>
    %272 = arith.addf %271, %270 : vector<8x64xf32>
    %273 = arith.divf %271, %272 : vector<8x64xf32>
    %274 = vector.extract_strided_slice %264 {offsets = [0, 64], sizes = [8, 32], strides = [1, 1]} : vector<8x96xf32> to vector<8x32xf32>
    %275 = vector.extract_strided_slice %273 {offsets = [0, 0], sizes = [8, 32], strides = [1, 1]} : vector<8x64xf32> to vector<8x32xf32>
    %276 = vector.extract_strided_slice %265 {offsets = [0, 64], sizes = [8, 32], strides = [1, 1]} : vector<8x96xf32> to vector<8x32xf32>
    %277 = vector.broadcast %1 : vector<1x32xf32> to vector<8x32xf32>
    %278 = arith.addf %276, %277 : vector<8x32xf32>
    %279 = arith.mulf %275, %278 : vector<8x32xf32>
    %280 = arith.addf %274, %279 : vector<8x32xf32>
    %281 = math.tanh %280 : vector<8x32xf32>
    %282 = vector.extract_strided_slice %273 {offsets = [0, 32], sizes = [8, 32], strides = [1, 1]} : vector<8x64xf32> to vector<8x32xf32>
    %283 = arith.subf %243, %281 : vector<8x32xf32>
    %284 = arith.mulf %282, %283 : vector<8x32xf32>
    %285 = arith.addf %281, %284 : vector<8x32xf32>
    %286 = tpu.concatenate %285, %263 in 1 : vector<8x32xf32>, vector<8x32xf32> -> vector<8x64xf32>
    %cst_41 = arith.constant dense<0.000000e+00> : vector<8x128xf32>
    %287 = tpu.matmul %286, %2, %cst_41 {dimension_numbers = #tpu.dot_dimension_numbers<[1], [0], [0], [1], [0, 0, 1, 1], [], []>} : vector<8x64xf32>, vector<64x128xf32>, vector<8x128xf32> -> vector<8x128xf32>
    %288 = vector.broadcast %3 : vector<1x128xf32> to vector<8x128xf32>
    %289 = arith.addf %287, %288 : vector<8x128xf32>
    %290 = vector.extract_strided_slice %289 {offsets = [0, 0], sizes = [8, 64], strides = [1, 1]} : vector<8x128xf32> to vector<8x64xf32>
    %291 = arith.negf %290 : vector<8x64xf32>
    %292 = math.exp %291 : vector<8x64xf32>
    %cst_42 = arith.constant 1.000000e+00 : f32
    %293 = vector.broadcast %cst_42 : f32 to vector<8x64xf32>
    %294 = arith.addf %293, %292 : vector<8x64xf32>
    %295 = arith.divf %293, %294 : vector<8x64xf32>
    %296 = vector.extract_strided_slice %289 {offsets = [0, 64], sizes = [8, 32], strides = [1, 1]} : vector<8x128xf32> to vector<8x32xf32>
    %297 = vector.extract_strided_slice %295 {offsets = [0, 0], sizes = [8, 32], strides = [1, 1]} : vector<8x64xf32> to vector<8x32xf32>
    %298 = vector.extract_strided_slice %289 {offsets = [0, 96], sizes = [8, 32], strides = [1, 1]} : vector<8x128xf32> to vector<8x32xf32>
    %299 = arith.mulf %297, %298 : vector<8x32xf32>
    %300 = arith.addf %296, %299 : vector<8x32xf32>
    %301 = math.tanh %300 : vector<8x32xf32>
    %302 = vector.extract_strided_slice %295 {offsets = [0, 32], sizes = [8, 32], strides = [1, 1]} : vector<8x64xf32> to vector<8x32xf32>
    %303 = arith.subf %263, %301 : vector<8x32xf32>
    %304 = arith.mulf %302, %303 : vector<8x32xf32>
    %305 = arith.addf %301, %304 : vector<8x32xf32>
    %306 = vector.extract_strided_slice %9 {offsets = [56, 0], sizes = [8, 96], strides = [1, 1]} : vector<64x96xf32> to vector<8x96xf32>
    %cst_43 = arith.constant dense<0.000000e+00> : vector<8x96xf32>
    %307 = tpu.matmul %285, %0, %cst_43 {dimension_numbers = #tpu.dot_dimension_numbers<[1], [0], [0], [1], [0, 0, 1, 1], [], []>} : vector<8x32xf32>, vector<32x96xf32>, vector<8x96xf32> -> vector<8x96xf32>
    %308 = vector.extract_strided_slice %306 {offsets = [0, 0], sizes = [8, 64], strides = [1, 1]} : vector<8x96xf32> to vector<8x64xf32>
    %309 = vector.extract_strided_slice %307 {offsets = [0, 0], sizes = [8, 64], strides = [1, 1]} : vector<8x96xf32> to vector<8x64xf32>
    %310 = arith.addf %308, %309 : vector<8x64xf32>
    %311 = arith.negf %310 : vector<8x64xf32>
    %312 = math.exp %311 : vector<8x64xf32>
    %cst_44 = arith.constant 1.000000e+00 : f32
    %313 = vector.broadcast %cst_44 : f32 to vector<8x64xf32>
    %314 = arith.addf %313, %312 : vector<8x64xf32>
    %315 = arith.divf %313, %314 : vector<8x64xf32>
    %316 = vector.extract_strided_slice %306 {offsets = [0, 64], sizes = [8, 32], strides = [1, 1]} : vector<8x96xf32> to vector<8x32xf32>
    %317 = vector.extract_strided_slice %315 {offsets = [0, 0], sizes = [8, 32], strides = [1, 1]} : vector<8x64xf32> to vector<8x32xf32>
    %318 = vector.extract_strided_slice %307 {offsets = [0, 64], sizes = [8, 32], strides = [1, 1]} : vector<8x96xf32> to vector<8x32xf32>
    %319 = vector.broadcast %1 : vector<1x32xf32> to vector<8x32xf32>
    %320 = arith.addf %318, %319 : vector<8x32xf32>
    %321 = arith.mulf %317, %320 : vector<8x32xf32>
    %322 = arith.addf %316, %321 : vector<8x32xf32>
    %323 = math.tanh %322 : vector<8x32xf32>
    %324 = vector.extract_strided_slice %315 {offsets = [0, 32], sizes = [8, 32], strides = [1, 1]} : vector<8x64xf32> to vector<8x32xf32>
    %325 = arith.subf %285, %323 : vector<8x32xf32>
    %326 = arith.mulf %324, %325 : vector<8x32xf32>
    %327 = arith.addf %323, %326 : vector<8x32xf32>
    %328 = tpu.concatenate %327, %305 in 1 : vector<8x32xf32>, vector<8x32xf32> -> vector<8x64xf32>
    %cst_45 = arith.constant dense<0.000000e+00> : vector<8x128xf32>
    %329 = tpu.matmul %328, %2, %cst_45 {dimension_numbers = #tpu.dot_dimension_numbers<[1], [0], [0], [1], [0, 0, 1, 1], [], []>} : vector<8x64xf32>, vector<64x128xf32>, vector<8x128xf32> -> vector<8x128xf32>
    %330 = vector.broadcast %3 : vector<1x128xf32> to vector<8x128xf32>
    %331 = arith.addf %329, %330 : vector<8x128xf32>
    %332 = vector.extract_strided_slice %331 {offsets = [0, 0], sizes = [8, 64], strides = [1, 1]} : vector<8x128xf32> to vector<8x64xf32>
    %333 = arith.negf %332 : vector<8x64xf32>
    %334 = math.exp %333 : vector<8x64xf32>
    %cst_46 = arith.constant 1.000000e+00 : f32
    %335 = vector.broadcast %cst_46 : f32 to vector<8x64xf32>
    %336 = arith.addf %335, %334 : vector<8x64xf32>
    %337 = arith.divf %335, %336 : vector<8x64xf32>
    %338 = vector.extract_strided_slice %331 {offsets = [0, 64], sizes = [8, 32], strides = [1, 1]} : vector<8x128xf32> to vector<8x32xf32>
    %339 = vector.extract_strided_slice %337 {offsets = [0, 0], sizes = [8, 32], strides = [1, 1]} : vector<8x64xf32> to vector<8x32xf32>
    %340 = vector.extract_strided_slice %331 {offsets = [0, 96], sizes = [8, 32], strides = [1, 1]} : vector<8x128xf32> to vector<8x32xf32>
    %341 = arith.mulf %339, %340 : vector<8x32xf32>
    %342 = arith.addf %338, %341 : vector<8x32xf32>
    %343 = math.tanh %342 : vector<8x32xf32>
    %344 = vector.extract_strided_slice %337 {offsets = [0, 32], sizes = [8, 32], strides = [1, 1]} : vector<8x64xf32> to vector<8x32xf32>
    %345 = arith.subf %305, %343 : vector<8x32xf32>
    %346 = arith.mulf %344, %345 : vector<8x32xf32>
    %347 = arith.addf %343, %346 : vector<8x32xf32>
    %c0_47 = arith.constant 0 : index
    %c0_48 = arith.constant 0 : index
    %348 = vector.load %arg7[%c0_47, %c0_48] : memref<32x32xf32, #tpu.memory_space<vmem>>, vector<32x32xf32>
    %cst_49 = arith.constant dense<0.000000e+00> : vector<8x32xf32>
    %349 = tpu.matmul %347, %348, %cst_49 {dimension_numbers = #tpu.dot_dimension_numbers<[1], [0], [0], [1], [0, 0, 1, 1], [], []>} : vector<8x32xf32>, vector<32x32xf32>, vector<8x32xf32> -> vector<8x32xf32>
    %c0_50 = arith.constant 0 : index
    %c0_51 = arith.constant 0 : index
    %350 = vector.load %arg8[%c0_50, %c0_51] : memref<1x32xf32, #tpu.memory_space<vmem>>, vector<1x32xf32>
    %351 = vector.broadcast %350 : vector<1x32xf32> to vector<8x32xf32>
    %352 = arith.addf %349, %351 : vector<8x32xf32>
    %cst_52 = arith.constant 0.000000e+00 : f32
    %353 = vector.broadcast %cst_52 : f32 to vector<8x32xf32>
    %354 = arith.maximumf %352, %353 : vector<8x32xf32>
    %c0_53 = arith.constant 0 : index
    %c0_54 = arith.constant 0 : index
    %355 = vector.load %arg9[%c0_53, %c0_54] : memref<32x32xf32, #tpu.memory_space<vmem>>, vector<32x32xf32>
    %cst_55 = arith.constant dense<0.000000e+00> : vector<8x32xf32>
    %356 = tpu.matmul %354, %355, %cst_55 {dimension_numbers = #tpu.dot_dimension_numbers<[1], [0], [0], [1], [0, 0, 1, 1], [], []>} : vector<8x32xf32>, vector<32x32xf32>, vector<8x32xf32> -> vector<8x32xf32>
    %c0_56 = arith.constant 0 : index
    %c0_57 = arith.constant 0 : index
    %357 = vector.load %arg10[%c0_56, %c0_57] : memref<1x32xf32, #tpu.memory_space<vmem>>, vector<1x32xf32>
    %358 = vector.broadcast %357 : vector<1x32xf32> to vector<8x32xf32>
    %359 = arith.addf %356, %358 : vector<8x32xf32>
    %cst_58 = arith.constant 0.000000e+00 : f32
    %360 = vector.broadcast %cst_58 : f32 to vector<8x32xf32>
    %361 = arith.maximumf %359, %360 : vector<8x32xf32>
    %c0_59 = arith.constant 0 : index
    %c0_60 = arith.constant 0 : index
    %362 = vector.load %arg11[%c0_59, %c0_60] : memref<32x4xf32, #tpu.memory_space<vmem>>, vector<32x4xf32>
    %cst_61 = arith.constant dense<0.000000e+00> : vector<8x4xf32>
    %363 = tpu.matmul %361, %362, %cst_61 {dimension_numbers = #tpu.dot_dimension_numbers<[1], [0], [0], [1], [0, 0, 1, 1], [], []>} : vector<8x32xf32>, vector<32x4xf32>, vector<8x4xf32> -> vector<8x4xf32>
    %c0_62 = arith.constant 0 : index
    %c0_63 = arith.constant 0 : index
    %364 = vector.load %arg12[%c0_62, %c0_63] : memref<1x4xf32, #tpu.memory_space<vmem>>, vector<1x4xf32>
    %365 = vector.broadcast %364 : vector<1x4xf32> to vector<8x4xf32>
    %366 = arith.addf %363, %365 : vector<8x4xf32>
    %c0_64 = arith.constant 0 : index
    %c0_65 = arith.constant 0 : index
    %367 = vector.load %arg13[%c0_64, %c0_65] : memref<8x4xf32, #tpu.memory_space<vmem>>, vector<8x4xf32>
    tpu.vector_store %arg13[%c0_64, %c0_65], %366 {strides = array<i32>} : memref<8x4xf32, #tpu.memory_space<vmem>>, vector<8x4xf32>,
    return
  }
}

</mosaic_0001>

<bundles_post_ra>
// kernel: gru_model_forward.1
= control target key start
LH: loop header
LB: loop body
LE: loop exit
PB: predicated region body
PF: predicated region fallthrough
CT: control target
= control target key end

     0   :  { %18 = vsyncpa [#allocation3], 0  ;;  %s2953_s25 = smov [#allocation2]   ;;  %s3477_s0 = inlined_call_operand.vmem [shape: f32[64,8], index: 0, kind: input, shape index: {}]   ;;  %s3478_s1 = inlined_call_operand.vmem [shape: f32[8,96], index: 1, kind: input, shape index: {}]   ;;  %s3479_s2 = inlined_call_operand.vmem [shape: f32[32,96], index: 2, kind: input, shape index: {}]   ;;  %s3480_s3 = inlined_call_operand.vmem [shape: f32[1,96], index: 3, kind: input, shape index: {}]   ;;  %s3481_s4 = inlined_call_operand.vmem [shape: f32[1,32], index: 4, kind: input, shape index: {}]   ;;  %s3482_s5 = inlined_call_operand.vmem [shape: f32[64,128], index: 5, kind: input, shape index: {}]   ;;  %s3483_s6 = inlined_call_operand.vmem [shape: f32[1,128], index: 6, kind: input, shape index: {}]   ;;  %s3484_s7 = inlined_call_operand.vmem [shape: f32[32,32], index: 7, kind: input, shape index: {}]   ;;  %s3485_s8 = inlined_call_operand.vmem [shape: f32[1,32], index: 8, kind: input, shape index: {}]   ;;  %s3486_s9 = inlined_call_operand.hbm [shape: f32[32,32], index: 9, kind: input, shape index: {}]   ;;  %s3487_s10 = inlined_call_operand.vmem [shape: f32[1,32], index: 10, kind: input, shape index: {}]   ;;  %s3488_s11 = inlined_call_operand.vmem [shape: f32[32,4], index: 11, kind: input, shape index: {}]   ;;  %s3489_s12 = inlined_call_operand.vmem [shape: f32[1,4], index: 12, kind: input, shape index: {}]   ;;  %s3490_s13 = inlined_call_operand.vmem [shape: f32[8,4], index: 13, kind: output, shape index: {}]  }
   0x1   :  { %s42_s26 = sshll.u32 %s2953_s25, 4  ;;  %s2929_s29 = scalar_lea.hbm %s3486_s9, 512  ;;  %s43_s26 = int_to_ptr.vmem [resolvable:$true] %s42_s26 }
   0x2   :  { %p2930_p0 = scmp.ne.s32.totalorder %s3486_s9, %s2929_s29  ;;  %p2933_p1 = scmp.lt.u32.totalorder %s2929_s29, %s3486_s9 }
   0x4   :  { %p2935_p2 = pnand %p2933_p1, %p2930_p0 }
   0x6   :  { %2938 = shalt.err (!%p2935_p2)
}
   0x7   :  { %s2939_s17 = scalar_lea.vmem %s43_s26, 512  ;;  %p2944_p4 = scmp.lt.s32.totalorder %s43_s26, %s43_s26 }
   0x8   :  { %p2940_p3 = scmp.ne.s32.totalorder %s43_s26, %s2939_s17  ;;  %p2945_p5 = scmp.lt.s32.totalorder %s2939_s17, %s2939_s17 }
   0xa   :  { %p2946_p6 = por %p2945_p5, %p2944_p4 }
   0xc   :  { %p2947_p7 = pnand %p2946_p6, %p2940_p3 }
   0xe   :  { %2950 = shalt.err (!%p2947_p7)
}
   0xf   :  { %s2954_s18 = smov 128   ;;  %s2955_s19 = smov 8  }
  0x10   :  { %48 = dma.hbm_to_vmem [thread:$0]  %s3486_s9, 512, %s43_s26, [#allocation3], %s2954_s18, %s2954_s18, %s2955_s19  }
  0x11   :  { %2951 = dma.done.wait [#allocation3], 512  }
  0x12   :  { %2952 = vsyncadd [#allocation3], 4294966784  ;;  %v2956_v0 = vmov 0.0|0.0   ;;  %vm2957_vm0 = vmmov 0   ;;  %v2958_v1 = vmov 0.0   ;;  %vm88_vm1 = vcmask 64512  }
  0x13   :  { %2661 = vmatprep.subr.bf16.mxu1 %v2956_v0  ;;  %2396 = vmatprep.mubr.msk.f32.mxu1 %vm2957_vm0, %v2958_v1  ;;  %v58_v2 = vld [vmem:[%s3479_s2] sm:$0xff]  ;;  %v59_v3 = vld [vmem:[%s3479_s2 + $0x8] sm:$0xff]  ;;  %v60_v8 = vld [vmem:[%s3479_s2 + $0x10] sm:$0xff]  ;;  %s2959_s19 = smov 64   ;;  %s2960_s20 = smov 96   ;;  %vm218_vm2 = vcmask 261120  }
  0x14   :  { %v80_v4 = vld [vmem:[%s3478_s1] sm:$0xff]  ;;  %v3056_v5 = vpack.c.bf16 %v59_v3, %v58_v2  ;;  %v73_v7 = vld [vmem:[%s3477_s0 + $0x8] sm:$0xff]  ;;  %v61_v9 = vld [vmem:[%s3479_s2 + $0x18] sm:$0xff]  ;;  %s2961_s29 = smov 32   ;;  %vm341_vm3 = vcmask 523264   ;;  %vm2183_vm4 = vcmask 31744  }
  0x15   :  { %2374 = vmatprep.subr.mxu0 %v80_v4  ;;  %v72_v6 = vld [vmem:[%s3477_s0] sm:$0xff]  ;;  %v3076_v11 = vpack.c.bf16 %v61_v9, %v60_v8  ;;  %v64_v32 = vld [vmem:[%s3482_s5 + $0x8] sm:$0xff]  ;;  %v74_v33 = vld [vmem:[%s3477_s0 + $0x10] sm:$0xff] }
  0x16   :  { %2375 = vmatpush3.msra.mxu0 %v80_v4  ;;  %2376 = vmatprep.mubr.msk.f32.mxu0 %vm88_vm1, %v72_v6  ;;  %v2200_v10 = vld [vmem:[%s3481_s4] ss:$0 sm:$0xff]  ;;  %v75_v35 = vld [vmem:[%s3477_s0 + $0x18] sm:$0xff]  ;;  %v65_v36 = vld [vmem:[%s3482_s5 + $0x10] sm:$0xff] }
  0x17   :  { %2663 = vmatpush3.bf16.msra.mxu1 %v3056_v5  ;;  %2377 = vmatmul.mubr.msk.f32.vlgmr.msra.gmra.mrb[0].mxu0 %vm88_vm1, %v73_v7  ;;  %v3099_v18 = vld [vmem:[%s3480_s3] ss:$0 sm:$0xff]  ;;  %v66_v37 = vld [vmem:[%s3482_s5 + $0x18] sm:$0xff]  ;;  %v77_v40 = vld [vmem:[%s3477_s0 + $0x28] sm:$0xff] }
  0x18   :  { %2664 = vmatprep.subr.bf16.mxu1 %v2956_v0  ;;  %304 = vrot.lane.b32.xlu0 %v2200_v10, %s2959_s19  ;;  %v63_v31 = vld [vmem:[%s3482_s5] sm:$0xff]  ;;  %v3130_v39 = vpack.c.bf16 %v66_v37, %v65_v36  ;;  %v68_v42 = vld [vmem:[%s3482_s5 + $0x28] sm:$0xff]  ;;  %v78_v43 = vld [vmem:[%s3477_s0 + $0x30] sm:$0xff] }
  0x19   :  { %2667 = vmatprep.subr.bf16.mxu0 %v2956_v0  ;;  %v3113_v34 = vpack.c.bf16 %v64_v32, %v63_v31  ;;  %2379 = vmatprep.mubr.msk.f32.mxu0 %vm88_vm1, %v74_v33  ;;  %v76_v38 = vld [vmem:[%s3477_s0 + $0x20] sm:$0xff]  ;;  %v79_v45 = vld [vmem:[%s3477_s0 + $0x38] sm:$0xff]  ;;  %v69_v47 = vld [vmem:[%s3482_s5 + $0x30] sm:$0xff] }
  0x1a   :  { %v67_v41 = vld [vmem:[%s3482_s5 + $0x20] sm:$0xff]  ;;  %v70_v48 = vld [vmem:[%s3482_s5 + $0x38] sm:$0xff] }
  0x1b   :  { %2666 = vmatpush3.bf16.msra.mxu1 %v3076_v11  ;;  %2380 = vmatmul.mubr.msk.f32.gmra.mrb[2].mxu0 %vm88_vm1, %v75_v35  ;;  %v3148_v44 = vpack.c.bf16 %v68_v42, %v67_v41  ;;  %v3164_v50 = vpack.c.bf16 %v70_v48, %v69_v47  ;;  %v3209_v61 = vld [vmem:[%s3483_s6] ss:$0 sm:$0xff] }
  0x1c   :  { %2679 = vmatprep.subr.bf16.mxu1 %v2956_v0  ;;  %2669 = vmatpush3.bf16.msra.mxu0 %v3113_v34 }
  0x1d   :  { %2382 = vmatprep.mubr.msk.f32.mxu0 %vm88_vm1, %v76_v38  ;;  %2670 = vmatprep.subr.bf16.mxu0 %v2956_v0 }
  0x1e   :  { %2397 = vmatmul.mubr.f32.vlgmr.msra.gmra.mrb[0].mxu1 %v2958_v1 }
  0x1f   :  { %2681 = vmatpush3.bf16.msra.mxu1 %v3056_v5  ;;  %2426 = vmatprep.mubr.msk.f32.mxu1 %vm2957_vm0, %v2958_v1 }
  0x20   :  { %2682 = vmatprep.subr.bf16.mxu1 %v2956_v0  ;;  %2383 = vmatmul.mubr.msk.f32.gmra.mrb[4].mxu0 %vm88_vm1, %v77_v40 }
  0x21   :  { %2672 = vmatpush3.bf16.msra.mxu0 %v3130_v39  ;;  %2385 = vmatprep.mubr.msk.f32.mxu0 %vm88_vm1, %v78_v43 }
  0x22   :  { %2673 = vmatprep.subr.bf16.mxu0 %v2956_v0 }
  0x23   :  { %2684 = vmatpush3.bf16.msra.mxu1 %v3076_v11 }
  0x24   :  { %2685 = vmatprep.subr.bf16.mxu1 %v2956_v0  ;;  %2386 = vmatmul.mubr.msk.f32.gmra.mrb[6].mxu0 %vm88_vm1, %v79_v45 }
  0x25   :  { %2675 = vmatpush3.bf16.msra.mxu0 %v3148_v44  ;;  %2415 = vmatprep.mubr.msk.f32.mxu0 %vm2957_vm0, %v2958_v1 }
  0x26   :  { %2676 = vmatprep.subr.bf16.mxu0 %v2956_v0 }
  0x29   :  { %2678 = vmatpush3.bf16.msra.mxu0 %v3164_v50 }
  0x2a   :  { %2697 = vmatprep.subr.bf16.mxu0 %v2956_v0 }
  0x8a   :  { %v3092_v14 = vpop.permute.xlu0 %304 }
  0xea   :  { %v3090_v12 = vpop.f32.mrb[0].mxu0 }
  0xeb   :  { %v179_v13 = vpop.f32.mrb[1].mxu0  ;;  %v185_v7 = vadd.f32 %v3090_v12, %v3099_v18 }
  0xec   :  { %v180_v19 = vadd.f32 %v3099_v18, %v179_v13 }
  0xee   :  { %v3175_v53 = vpop.f32.mrb[2].mxu0 }
  0xef   :  { %v3177_v54 = vpop.f32.mrb[3].mxu0 }
  0xf1   :  { %v288_v15 = vpop.f32.mrb[0].mxu1 }
  0xf2   :  { %v307_v16 = vadd.f32 %v3092_v14, %v288_v15  ;;  %v2398_v17 = vpop.f32.mrb[1].mxu1  ;;  %v292_v20 = vadd.f32 %v288_v15, %v180_v19 }
  0xf3   :  { %v3179_v55 = vpop.f32.mrb[4].mxu0 }
  0xf4   :  { %309 = vrot.lane.b32.xlu0 %v307_v16, %s2959_s19  ;;  %v2199_v21 = vmul.f32 -1.442695, %v292_v20  ;;  %v3181_v56 = vpop.f32.mrb[5].mxu0 }
  0xf6   :  { %2832 = vpow2.f32 %v2199_v21 }
  0xf7   :  { %v3183_v57 = vpop.f32.mrb[6].mxu0 }
  0xf8   :  { %v3185_v58 = vpop.f32.mrb[7].mxu0 }
 0x100   :  { %v2833_v22 = vpop.eup %2832 }
 0x101   :  { %v296_v23 = vadd.f32 1.0, %v2833_v22 }
 0x103   :  { %2834 = vrcp.f32 %v296_v23 }
 0x10d   :  { %v2835_v24 = vpop.eup %2834 }
 0x166   :  { %v310_v25 = vpop.permute.xlu0 %309 }
 0x167   :  { %v312_v26 = vmul.f32 %v2835_v24, %v310_v25 }
 0x169   :  { %314 = vrot.lane.b32.xlu1 %v312_v26, %s2959_s19 }
 0x1db   :  { %v315_v27 = vpop.permute.xlu1 %314 }
 0x1dc   :  { %v317_v28 = vadd.f32 %v315_v27, %v180_v19 }
 0x1de   :  { %2836 = vtanh.f32 %v317_v28 }
 0x1e8   :  { %v2837_v29 = vpop.eup %2836 }
 0x1e9   :  { %v319_v30 = vsub.f32 0.0, %v2837_v29 }
 0x1eb   :  { %321 = vrot.lane.b32.xlu1 %v319_v30, %s2960_s20 }
 0x25d   :  { %v322_v46 = vpop.permute.xlu1 %321 }
 0x25e   :  { %v324_v49 = vmul.f32 %v2835_v24, %v322_v46 }
 0x260   :  { %326 = vrot.lane.b32.xlu0 %v324_v49, %s2961_s29 }
 0x2d2   :  { %v327_v51 = vpop.permute.xlu0 %326 }
 0x2d3   :  { %v3171_v52 = vadd.f32 %v2837_v29, %v327_v51 }
 0x2d5   :  { %331 = vrot.lane.b32.xlu1 %v3171_v52, %s2959_s19 }
 0x347   :  { %v332_v59 = vpop.permute.xlu1 %331 }
 0x348   :  { %v334_v60 = vsel %vm218_vm2, %v332_v59, 0.0  ;;  %2427 = vmatmul.mubr.msk.f32.vlgmr.msra.gmra.mrb[2].mxu1 %vm218_vm2, %v332_v59  ;;  %v190_v59 = vadd.f32 %v3099_v18, %v3177_v54 }
 0x349   :  { %2416 = vmatmul.mubr.msk.f32.vlgmr.msra.gmra.mrb[8].mxu0 %vm341_vm3, %v334_v60  ;;  %2687 = vmatpush3.bf16.msra.mxu1 %v3113_v34 }
 0x34a   :  { %2688 = vmatprep.subr.bf16.mxu1 %v2956_v0  ;;  %2699 = vmatpush3.bf16.msra.mxu0 %v3056_v5 }
 0x34b   :  { %2700 = vmatprep.subr.bf16.mxu0 %v2956_v0  ;;  %2456 = vmatprep.mubr.msk.f32.mxu0 %vm2957_vm0, %v2958_v1 }
 0x34c   :  { %2445 = vmatprep.mubr.msk.f32.mxu1 %vm2957_vm0, %v2958_v1 }
 0x34d   :  { %2690 = vmatpush3.bf16.msra.mxu1 %v3130_v39 }
 0x34e   :  { %2691 = vmatprep.subr.bf16.mxu1 %v2956_v0  ;;  %2702 = vmatpush3.bf16.msra.mxu0 %v3076_v11 }
 0x34f   :  { %2703 = vmatprep.subr.bf16.mxu0 %v2956_v0 }
 0x351   :  { %2693 = vmatpush3.bf16.msra.mxu1 %v3148_v44 }
 0x352   :  { %2694 = vmatprep.subr.bf16.mxu1 %v2956_v0 }
 0x355   :  { %2696 = vmatpush3.bf16.msra.mxu1 %v3164_v50 }
 0x356   :  { %2715 = vmatprep.subr.bf16.mxu1 %v2956_v0 }
 0x41b   :  { %v511_v62 = vpop.f32.mrb[2].mxu1 }
 0x41c   :  { %v522_v63 = vadd.f32 %v511_v62, %v3092_v14  ;;  %v411_v2 = vpop.f32.mrb[8].mxu0  ;;  %v2428_v3 = vpop.f32.mrb[3].mxu1  ;;  %v515_v8 = vadd.f32 %v511_v62, %v185_v7 }
 0x41d   :  { %v412_v4 = vadd.f32 %v3209_v61, %v411_v2  ;;  %v2417_v6 = vpop.f32.mrb[9].mxu0 }
 0x41e   :  { %524 = vrot.lane.b32.xlu1 %v522_v63, %s2959_s19  ;;  %v2205_v9 = vmul.f32 -1.442695, %v515_v8 }
 0x41f   :  { %422 = vrot.lane.b32.xlu0 %v412_v4, %s2961_s29  ;;  %v2203_v10 = vmul.f32 -1.442695, %v412_v4 }
 0x420   :  { %2838 = vpow2.f32 %v2205_v9 }
 0x421   :  { %2840 = vpow2.f32 %v2203_v10 }
 0x42a   :  { %v2839_v13 = vpop.eup %2838 }
 0x42b   :  { %v2841_v15 = vpop.eup %2840  ;;  %v519_v16 = vadd.f32 1.0, %v2839_v13 }
 0x42c   :  { %v418_v17 = vadd.f32 1.0, %v2841_v15 }
 0x42d   :  { %2842 = vrcp.f32 %v519_v16 }
 0x42e   :  { %2844 = vrcp.f32 %v418_v17 }
 0x437   :  { %v2843_v19 = vpop.eup %2842 }
 0x438   :  { %v2845_v21 = vpop.eup %2844 }
 0x490   :  { %v525_v20 = vpop.permute.xlu1 %524 }
 0x491   :  { %v527_v22 = vmul.f32 %v2843_v19, %v525_v20  ;;  %v423_v23 = vpop.permute.xlu0 %422 }
 0x492   :  { %v425_v24 = vmul.f32 %v2845_v21, %v423_v23 }
 0x493   :  { %529 = vrot.lane.b32.xlu1 %v527_v22, %s2959_s19 }
 0x494   :  { %427 = vrot.lane.b32.xlu0 %v425_v24, %s2959_s19 }
 0x505   :  { %v530_v12 = vpop.permute.xlu1 %529 }
 0x506   :  { %v532_v25 = vadd.f32 %v530_v12, %v185_v7  ;;  %v428_v26 = vpop.permute.xlu0 %427 }
 0x507   :  { %v430_v27 = vadd.f32 %v428_v26, %v412_v4 }
 0x508   :  { %2846 = vtanh.f32 %v532_v25 }
 0x509   :  { %2848 = vtanh.f32 %v430_v27 }
 0x512   :  { %v2847_v28 = vpop.eup %2846 }
 0x513   :  { %v2849_v29 = vpop.eup %2848  ;;  %v534_v30 = vsub.f32 %v3171_v52, %v2847_v28 }
 0x514   :  { %v432_v31 = vsub.f32 0.0, %v2849_v29 }
 0x515   :  { %536 = vrot.lane.b32.xlu1 %v534_v30, %s2960_s20 }
 0x516   :  { %434 = vrot.lane.b32.xlu0 %v432_v31, %s2960_s20 }
 0x587   :  { %v537_v32 = vpop.permute.xlu1 %536 }
 0x588   :  { %v539_v33 = vmul.f32 %v2843_v19, %v537_v32  ;;  %v435_v35 = vpop.permute.xlu0 %434 }
 0x589   :  { %v437_v36 = vmul.f32 %v2845_v21, %v435_v35 }
 0x58a   :  { %541 = vrot.lane.b32.xlu1 %v539_v33, %s2961_s29 }
 0x58b   :  { %439 = vrot.lane.b32.xlu0 %v437_v36, %s2961_s29 }
 0x5fc   :  { %v542_v37 = vpop.permute.xlu1 %541 }
 0x5fd   :  { %v544_v38 = vadd.f32 %v2847_v28, %v542_v37  ;;  %v440_v40 = vpop.permute.xlu0 %439 }
 0x5fe   :  { %v442_v41 = vadd.f32 %v2849_v29, %v440_v40 }
 0x5ff   :  { %546 = vrot.lane.b32.xlu0 %v544_v38, %s2959_s19 }
 0x600   :  { %550 = vrot.lane.b32.xlu1 %v442_v41, %s2960_s20 }
 0x671   :  { %v547_v42 = vpop.permute.xlu0 %546 }
 0x672   :  { %2457 = vmatmul.mubr.msk.f32.vlgmr.msra.gmra.mrb[10].mxu0 %vm218_vm2, %v547_v42  ;;  %v551_v43 = vpop.permute.xlu1 %550 }
 0x673   :  { %v553_v45 = vsel %vm218_vm2, %v547_v42, %v551_v43  ;;  %2705 = vmatpush3.bf16.msra.mxu0 %v3113_v34  ;;  %2475 = vmatprep.mubr.msk.f32.mxu0 %vm2957_vm0, %v2958_v1  ;;  %v195_v42 = vadd.f32 %v3175_v53, %v3099_v18 }
 0x674   :  { %2446 = vmatmul.mubr.msk.f32.vlgmr.msra.gmra.mrb[4].mxu1 %vm341_vm3, %v553_v45  ;;  %2706 = vmatprep.subr.bf16.mxu0 %v2956_v0 }
 0x675   :  { %2717 = vmatpush3.bf16.msra.mxu1 %v3056_v5  ;;  %2486 = vmatprep.mubr.msk.f32.mxu1 %vm2957_vm0, %v2958_v1 }
 0x676   :  { %2718 = vmatprep.subr.bf16.mxu1 %v2956_v0 }
 0x677   :  { %2708 = vmatpush3.bf16.msra.mxu0 %v3130_v39 }
 0x678   :  { %2709 = vmatprep.subr.bf16.mxu0 %v2956_v0 }
 0x679   :  { %2720 = vmatpush3.bf16.msra.mxu1 %v3076_v11 }
 0x67a   :  { %2721 = vmatprep.subr.bf16.mxu1 %v2956_v0 }
 0x67b   :  { %2711 = vmatpush3.bf16.msra.mxu0 %v3148_v44 }
 0x67c   :  { %2712 = vmatprep.subr.bf16.mxu0 %v2956_v0 }
 0x67f   :  { %2714 = vmatpush3.bf16.msra.mxu0 %v3164_v50 }
 0x680   :  { %2733 = vmatprep.subr.bf16.mxu0 %v2956_v0 }
 0x745   :  { %v723_v46 = vpop.f32.mrb[10].mxu0 }
 0x746   :  { %v734_v47 = vadd.f32 %v723_v46, %v3092_v14  ;;  %v2458_v48 = vpop.f32.mrb[11].mxu0  ;;  %v727_v60 = vadd.f32 %v723_v46, %v190_v59 }
 0x747   :  { %v623_v49 = vpop.f32.mrb[4].mxu1 }
 0x748   :  { %v624_v51 = vadd.f32 %v3209_v61, %v623_v49  ;;  %736 = vrot.lane.b32.xlu1 %v734_v47, %s2959_s19  ;;  %v2447_v52 = vpop.f32.mrb[5].mxu1  ;;  %v2209_v62 = vmul.f32 -1.442695, %v727_v60 }
 0x74a   :  { %634 = vrot.lane.b32.xlu0 %v624_v51, %s2961_s29  ;;  %v2207_v63 = vmul.f32 -1.442695, %v624_v51  ;;  %2850 = vpow2.f32 %v2209_v62 }
 0x74c   :  { %2852 = vpow2.f32 %v2207_v63 }
 0x754   :  { %v2851_v2 = vpop.eup %2850 }
 0x755   :  { %v731_v4 = vadd.f32 1.0, %v2851_v2 }
 0x756   :  { %v2853_v3 = vpop.eup %2852 }
 0x757   :  { %v630_v6 = vadd.f32 1.0, %v2853_v3  ;;  %2854 = vrcp.f32 %v731_v4 }
 0x759   :  { %2856 = vrcp.f32 %v630_v6 }
 0x761   :  { %v2855_v7 = vpop.eup %2854 }
 0x763   :  { %v2857_v10 = vpop.eup %2856 }
 0x7ba   :  { %v737_v8 = vpop.permute.xlu1 %736 }
 0x7bb   :  { %v739_v9 = vmul.f32 %v2855_v7, %v737_v8 }
 0x7bc   :  { %v635_v13 = vpop.permute.xlu0 %634 }
 0x7bd   :  { %v637_v15 = vmul.f32 %v2857_v10, %v635_v13  ;;  %741 = vrot.lane.b32.xlu1 %v739_v9, %s2959_s19 }
 0x7bf   :  { %639 = vrot.lane.b32.xlu0 %v637_v15, %s2959_s19 }
 0x82f   :  { %v742_v54 = vpop.permute.xlu1 %741 }
 0x830   :  { %v744_v16 = vadd.f32 %v742_v54, %v190_v59 }
 0x831   :  { %v640_v17 = vpop.permute.xlu0 %639 }
 0x832   :  { %2858 = vtanh.f32 %v744_v16  ;;  %v642_v19 = vadd.f32 %v640_v17, %v624_v51 }
 0x834   :  { %2860 = vtanh.f32 %v642_v19 }
 0x83c   :  { %v2859_v20 = vpop.eup %2858 }
 0x83d   :  { %v746_v21 = vsub.f32 %v544_v38, %v2859_v20 }
 0x83e   :  { %v2861_v22 = vpop.eup %2860 }
 0x83f   :  { %748 = vrot.lane.b32.xlu1 %v746_v21, %s2960_s20  ;;  %v644_v23 = vsub.f32 %v442_v41, %v2861_v22 }
 0x841   :  { %646 = vrot.lane.b32.xlu0 %v644_v23, %s2960_s20 }
 0x8b1   :  { %v749_v24 = vpop.permute.xlu1 %748 }
 0x8b2   :  { %v751_v12 = vmul.f32 %v2855_v7, %v749_v24 }
 0x8b3   :  { %v647_v25 = vpop.permute.xlu0 %646 }
 0x8b4   :  { %v649_v26 = vmul.f32 %v2857_v10, %v647_v25  ;;  %753 = vrot.lane.b32.xlu1 %v751_v12, %s2961_s29 }
 0x8b6   :  { %651 = vrot.lane.b32.xlu0 %v649_v26, %s2961_s29 }
 0x926   :  { %v754_v27 = vpop.permute.xlu1 %753 }
 0x927   :  { %v756_v28 = vadd.f32 %v2859_v20, %v754_v27 }
 0x928   :  { %v652_v29 = vpop.permute.xlu0 %651 }
 0x929   :  { %v654_v30 = vadd.f32 %v2861_v22, %v652_v29  ;;  %758 = vrot.lane.b32.xlu0 %v756_v28, %s2959_s19 }
 0x92b   :  { %762 = vrot.lane.b32.xlu1 %v654_v30, %s2960_s20 }
 0x99b   :  { %v759_v31 = vpop.permute.xlu0 %758 }
 0x99c   :  { %2487 = vmatmul.mubr.msk.f32.vlgmr.msra.gmra.mrb[6].mxu1 %vm218_vm2, %v759_v31 }
 0x99d   :  { %v763_v32 = vpop.permute.xlu1 %762  ;;  %2723 = vmatpush3.bf16.msra.mxu1 %v3113_v34  ;;  %2505 = vmatprep.mubr.msk.f32.mxu1 %vm2957_vm0, %v2958_v1 }
 0x99e   :  { %v765_v33 = vsel %vm218_vm2, %v759_v31, %v763_v32  ;;  %2724 = vmatprep.subr.bf16.mxu1 %v2956_v0 }
 0x99f   :  { %2476 = vmatmul.mubr.msk.f32.vlgmr.msra.gmra.mrb[12].mxu0 %vm341_vm3, %v765_v33 }
 0x9a0   :  { %2735 = vmatpush3.bf16.msra.mxu0 %v3056_v5  ;;  %2516 = vmatprep.mubr.msk.f32.mxu0 %vm2957_vm0, %v2958_v1 }
 0x9a1   :  { %2726 = vmatpush3.bf16.msra.mxu1 %v3130_v39  ;;  %2736 = vmatprep.subr.bf16.mxu0 %v2956_v0 }
 0x9a2   :  { %2727 = vmatprep.subr.bf16.mxu1 %v2956_v0 }
 0x9a4   :  { %2738 = vmatpush3.bf16.msra.mxu0 %v3076_v11 }
 0x9a5   :  { %2729 = vmatpush3.bf16.msra.mxu1 %v3148_v44  ;;  %2739 = vmatprep.subr.bf16.mxu0 %v2956_v0 }
 0x9a6   :  { %2730 = vmatprep.subr.bf16.mxu1 %v2956_v0 }
 0x9a9   :  { %2732 = vmatpush3.bf16.msra.mxu1 %v3164_v50 }
 0x9aa   :  { %2751 = vmatprep.subr.bf16.mxu1 %v2956_v0 }
 0xa6f   :  { %v935_v35 = vpop.f32.mrb[6].mxu1 }
 0xa70   :  { %v946_v36 = vadd.f32 %v935_v35, %v3092_v14  ;;  %v2488_v37 = vpop.f32.mrb[7].mxu1  ;;  %v939_v43 = vadd.f32 %v935_v35, %v195_v42 }
 0xa72   :  { %v835_v38 = vpop.f32.mrb[12].mxu0  ;;  %948 = vrot.lane.b32.xlu1 %v946_v36, %s2959_s19  ;;  %v2213_v45 = vmul.f32 -1.442695, %v939_v43 }
 0xa73   :  { %v836_v40 = vadd.f32 %v3209_v61, %v835_v38  ;;  %v2477_v41 = vpop.f32.mrb[13].mxu0 }
 0xa74   :  { %2862 = vpow2.f32 %v2213_v45 }
 0xa75   :  { %846 = vrot.lane.b32.xlu0 %v836_v40, %s2961_s29  ;;  %v2211_v46 = vmul.f32 -1.442695, %v836_v40 }
 0xa77   :  { %2864 = vpow2.f32 %v2211_v46 }
 0xa7e   :  { %v2863_v47 = vpop.eup %2862 }
 0xa7f   :  { %v943_v49 = vadd.f32 1.0, %v2863_v47 }
 0xa81   :  { %v2865_v48 = vpop.eup %2864  ;;  %2866 = vrcp.f32 %v943_v49 }
 0xa82   :  { %v842_v51 = vadd.f32 1.0, %v2865_v48 }
 0xa84   :  { %2868 = vrcp.f32 %v842_v51 }
 0xa8b   :  { %v2867_v52 = vpop.eup %2866 }
 0xa8e   :  { %v2869_v62 = vpop.eup %2868 }
 0xae4   :  { %v949_v59 = vpop.permute.xlu1 %948 }
 0xae5   :  { %v951_v60 = vmul.f32 %v2867_v52, %v949_v59 }
 0xae7   :  { %v847_v63 = vpop.permute.xlu0 %846  ;;  %953 = vrot.lane.b32.xlu1 %v951_v60, %s2959_s19 }
 0xae8   :  { %v849_v2 = vmul.f32 %v2869_v62, %v847_v63 }
 0xaea   :  { %851 = vrot.lane.b32.xlu0 %v849_v2, %s2959_s19 }
 0xb59   :  { %v954_v53 = vpop.permute.xlu1 %953 }
 0xb5a   :  { %v956_v3 = vadd.f32 %v954_v53, %v195_v42 }
 0xb5c   :  { %2870 = vtanh.f32 %v956_v3  ;;  %v852_v4 = vpop.permute.xlu0 %851 }
 0xb5d   :  { %v854_v6 = vadd.f32 %v852_v4, %v836_v40 }
 0xb5f   :  { %2872 = vtanh.f32 %v854_v6 }
 0xb66   :  { %v2871_v7 = vpop.eup %2870 }
 0xb67   :  { %v958_v8 = vsub.f32 %v756_v28, %v2871_v7 }
 0xb69   :  { %v2873_v9 = vpop.eup %2872  ;;  %960 = vrot.lane.b32.xlu1 %v958_v8, %s2960_s20 }
 0xb6a   :  { %v856_v10 = vsub.f32 %v654_v30, %v2873_v9  ;;  %v200_v30 = vadd.f32 %v3099_v18, %v3181_v56 }
 0xb6c   :  { %858 = vrot.lane.b32.xlu0 %v856_v10, %s2960_s20 }
 0xbdb   :  { %v961_v13 = vpop.permute.xlu1 %960 }
 0xbdc   :  { %v963_v15 = vmul.f32 %v2867_v52, %v961_v13 }
 0xbde   :  { %v859_v54 = vpop.permute.xlu0 %858  ;;  %965 = vrot.lane.b32.xlu1 %v963_v15, %s2961_s29 }
 0xbdf   :  { %v861_v16 = vmul.f32 %v2869_v62, %v859_v54 }
 0xbe1   :  { %863 = vrot.lane.b32.xlu0 %v861_v16, %s2961_s29 }
 0xc50   :  { %v966_v17 = vpop.permute.xlu1 %965 }
 0xc51   :  { %v968_v19 = vadd.f32 %v2871_v7, %v966_v17 }
 0xc53   :  { %v864_v20 = vpop.permute.xlu0 %863  ;;  %970 = vrot.lane.b32.xlu0 %v968_v19, %s2959_s19 }
 0xc54   :  { %v866_v21 = vadd.f32 %v2873_v9, %v864_v20  ;;  %v205_v20 = vadd.f32 %v3179_v55, %v3099_v18 }
 0xc56   :  { %974 = vrot.lane.b32.xlu1 %v866_v21, %s2960_s20 }
 0xcc5   :  { %v971_v22 = vpop.permute.xlu0 %970 }
 0xcc6   :  { %2517 = vmatmul.mubr.msk.f32.vlgmr.msra.gmra.mrb[14].mxu0 %vm218_vm2, %v971_v22 }
 0xcc7   :  { %2741 = vmatpush3.bf16.msra.mxu0 %v3113_v34  ;;  %2535 = vmatprep.mubr.msk.f32.mxu0 %vm2957_vm0, %v2958_v1 }
 0xcc8   :  { %v975_v23 = vpop.permute.xlu1 %974  ;;  %2742 = vmatprep.subr.bf16.mxu0 %v2956_v0 }
 0xcc9   :  { %v977_v24 = vsel %vm218_vm2, %v971_v22, %v975_v23 }
 0xcca   :  { %2506 = vmatmul.mubr.msk.f32.vlgmr.msra.gmra.mrb[8].mxu1 %vm341_vm3, %v977_v24 }
 0xccb   :  { %2753 = vmatpush3.bf16.msra.mxu1 %v3056_v5  ;;  %2744 = vmatpush3.bf16.msra.mxu0 %v3130_v39 }
 0xccc   :  { %2754 = vmatprep.subr.bf16.mxu1 %v2956_v0  ;;  %2745 = vmatprep.subr.bf16.mxu0 %v2956_v0 }
 0xccd   :  { %2546 = vmatprep.mubr.msk.f32.mxu1 %vm2957_vm0, %v2958_v1 }
 0xccf   :  { %2756 = vmatpush3.bf16.msra.mxu1 %v3076_v11  ;;  %2747 = vmatpush3.bf16.msra.mxu0 %v3148_v44 }
 0xcd0   :  { %2748 = vmatprep.subr.bf16.mxu0 %v2956_v0  ;;  %2757 = vmatprep.subr.bf16.mxu1 %v2956_v0 }
 0xcd3   :  { %2750 = vmatpush3.bf16.msra.mxu0 %v3164_v50 }
 0xcd4   :  { %2769 = vmatprep.subr.bf16.mxu0 %v2956_v0 }
 0xd99   :  { %v1147_v12 = vpop.f32.mrb[14].mxu0 }
 0xd9a   :  { %v1158_v25 = vadd.f32 %v1147_v12, %v3092_v14  ;;  %v2518_v26 = vpop.f32.mrb[15].mxu0  ;;  %v1151_v31 = vadd.f32 %v1147_v12, %v200_v30 }
 0xd9c   :  { %1160 = vrot.lane.b32.xlu1 %v1158_v25, %s2959_s19  ;;  %v2217_v32 = vmul.f32 -1.442695, %v1151_v31 }
 0xd9d   :  { %v1047_v27 = vpop.f32.mrb[8].mxu1 }
 0xd9e   :  { %v1048_v28 = vadd.f32 %v3209_v61, %v1047_v27  ;;  %v2507_v29 = vpop.f32.mrb[9].mxu1  ;;  %2874 = vpow2.f32 %v2217_v32 }
 0xda0   :  { %1058 = vrot.lane.b32.xlu0 %v1048_v28, %s2961_s29  ;;  %v2215_v33 = vmul.f32 -1.442695, %v1048_v28 }
 0xda2   :  { %2876 = vpow2.f32 %v2215_v33 }
 0xda8   :  { %v2875_v35 = vpop.eup %2874 }
 0xda9   :  { %v1155_v36 = vadd.f32 1.0, %v2875_v35 }
 0xdab   :  { %2878 = vrcp.f32 %v1155_v36 }
 0xdac   :  { %v2877_v37 = vpop.eup %2876 }
 0xdad   :  { %v1054_v38 = vadd.f32 1.0, %v2877_v37 }
 0xdaf   :  { %2880 = vrcp.f32 %v1054_v38 }
 0xdb5   :  { %v2879_v40 = vpop.eup %2878 }
 0xdb9   :  { %v2881_v43 = vpop.eup %2880 }
 0xe0e   :  { %v1161_v41 = vpop.permute.xlu1 %1160 }
 0xe0f   :  { %v1163_v42 = vmul.f32 %v2879_v40, %v1161_v41 }
 0xe11   :  { %1165 = vrot.lane.b32.xlu1 %v1163_v42, %s2959_s19 }
 0xe12   :  { %v1059_v45 = vpop.permute.xlu0 %1058 }
 0xe13   :  { %v1061_v46 = vmul.f32 %v2881_v43, %v1059_v45 }
 0xe15   :  { %1063 = vrot.lane.b32.xlu0 %v1061_v46, %s2959_s19 }
 0xe83   :  { %v1166_v56 = vpop.permute.xlu1 %1165 }
 0xe84   :  { %v1168_v47 = vadd.f32 %v1166_v56, %v200_v30 }
 0xe86   :  { %2882 = vtanh.f32 %v1168_v47 }
 0xe87   :  { %v1064_v48 = vpop.permute.xlu0 %1063 }
 0xe88   :  { %v1066_v49 = vadd.f32 %v1064_v48, %v1048_v28 }
 0xe8a   :  { %2884 = vtanh.f32 %v1066_v49 }
 0xe90   :  { %v2883_v51 = vpop.eup %2882 }
 0xe91   :  { %v1170_v52 = vsub.f32 %v968_v19, %v2883_v51 }
 0xe93   :  { %1172 = vrot.lane.b32.xlu1 %v1170_v52, %s2960_s20 }
 0xe94   :  { %v2885_v59 = vpop.eup %2884 }
 0xe95   :  { %v1068_v60 = vsub.f32 %v866_v21, %v2885_v59 }
 0xe97   :  { %1070 = vrot.lane.b32.xlu0 %v1068_v60, %s2960_s20 }
 0xf05   :  { %v1173_v62 = vpop.permute.xlu1 %1172 }
 0xf06   :  { %v1175_v63 = vmul.f32 %v2879_v40, %v1173_v62 }
 0xf08   :  { %1177 = vrot.lane.b32.xlu1 %v1175_v63, %s2961_s29 }
 0xf09   :  { %v1071_v2 = vpop.permute.xlu0 %1070 }
 0xf0a   :  { %v1073_v53 = vmul.f32 %v2881_v43, %v1071_v2 }
 0xf0c   :  { %1075 = vrot.lane.b32.xlu0 %v1073_v53, %s2961_s29 }
 0xf7a   :  { %v1178_v3 = vpop.permute.xlu1 %1177 }
 0xf7b   :  { %v1180_v4 = vadd.f32 %v2883_v51, %v1178_v3 }
 0xf7d   :  { %1182 = vrot.lane.b32.xlu0 %v1180_v4, %s2959_s19 }
 0xf7e   :  { %v1076_v6 = vpop.permute.xlu0 %1075 }
 0xf7f   :  { %v1078_v7 = vadd.f32 %v2885_v59, %v1076_v6 }
 0xf81   :  { %1186 = vrot.lane.b32.xlu1 %v1078_v7, %s2960_s20 }
 0xfef   :  { %v1183_v8 = vpop.permute.xlu0 %1182 }
 0xff0   :  { %2547 = vmatmul.mubr.msk.f32.vlgmr.msra.gmra.mrb[10].mxu1 %vm218_vm2, %v1183_v8 }
 0xff1   :  { %2759 = vmatpush3.bf16.msra.mxu1 %v3113_v34  ;;  %2565 = vmatprep.mubr.msk.f32.mxu1 %vm2957_vm0, %v2958_v1 }
 0xff2   :  { %2760 = vmatprep.subr.bf16.mxu1 %v2956_v0 }
 0xff3   :  { %v1187_v9 = vpop.permute.xlu1 %1186 }
 0xff4   :  { %v1189_v10 = vsel %vm218_vm2, %v1183_v8, %v1187_v9 }
 0xff5   :  { %2536 = vmatmul.mubr.msk.f32.vlgmr.msra.gmra.mrb[16].mxu0 %vm341_vm3, %v1189_v10  ;;  %2762 = vmatpush3.bf16.msra.mxu1 %v3130_v39 }
 0xff6   :  { %2771 = vmatpush3.bf16.msra.mxu0 %v3056_v5  ;;  %2763 = vmatprep.subr.bf16.mxu1 %v2956_v0 }
 0xff7   :  { %2772 = vmatprep.subr.bf16.mxu0 %v2956_v0  ;;  %2576 = vmatprep.mubr.msk.f32.mxu0 %vm2957_vm0, %v2958_v1 }
 0xff9   :  { %2765 = vmatpush3.bf16.msra.mxu1 %v3148_v44 }
 0xffa   :  { %2774 = vmatpush3.bf16.msra.mxu0 %v3076_v11  ;;  %2766 = vmatprep.subr.bf16.mxu1 %v2956_v0 }
 0xffb   :  { %2775 = vmatprep.subr.bf16.mxu0 %v2956_v0 }
 0xffd   :  { %2768 = vmatpush3.bf16.msra.mxu1 %v3164_v50 }
 0xffe   :  { %2787 = vmatprep.subr.bf16.mxu1 %v2956_v0 }
0x10c3   :  { %v1359_v13 = vpop.f32.mrb[10].mxu1 }
0x10c4   :  { %v1370_v15 = vadd.f32 %v1359_v13, %v3092_v14  ;;  %v2548_v54 = vpop.f32.mrb[11].mxu1  ;;  %v1363_v21 = vadd.f32 %v1359_v13, %v205_v20 }
0x10c6   :  { %1372 = vrot.lane.b32.xlu1 %v1370_v15, %s2959_s19  ;;  %v2221_v22 = vmul.f32 -1.442695, %v1363_v21 }
0x10c8   :  { %v1259_v16 = vpop.f32.mrb[16].mxu0  ;;  %2886 = vpow2.f32 %v2221_v22 }
0x10c9   :  { %v1260_v17 = vadd.f32 %v3209_v61, %v1259_v16  ;;  %v2537_v19 = vpop.f32.mrb[17].mxu0 }
0x10cb   :  { %1270 = vrot.lane.b32.xlu0 %v1260_v17, %s2961_s29  ;;  %v2219_v23 = vmul.f32 -1.442695, %v1260_v17 }
0x10cd   :  { %2888 = vpow2.f32 %v2219_v23 }
0x10d2   :  { %v2887_v24 = vpop.eup %2886 }
0x10d3   :  { %v1367_v12 = vadd.f32 1.0, %v2887_v24 }
0x10d5   :  { %2890 = vrcp.f32 %v1367_v12 }
0x10d7   :  { %v2889_v25 = vpop.eup %2888 }
0x10d8   :  { %v1266_v26 = vadd.f32 1.0, %v2889_v25 }
0x10da   :  { %2892 = vrcp.f32 %v1266_v26 }
0x10df   :  { %v2891_v27 = vpop.eup %2890 }
0x10e4   :  { %v2893_v30 = vpop.eup %2892 }
0x1138   :  { %v1373_v28 = vpop.permute.xlu1 %1372 }
0x1139   :  { %v1375_v29 = vmul.f32 %v2891_v27, %v1373_v28 }
0x113b   :  { %1377 = vrot.lane.b32.xlu1 %v1375_v29, %s2959_s19 }
0x113d   :  { %v1271_v31 = vpop.permute.xlu0 %1270 }
0x113e   :  { %v1273_v32 = vmul.f32 %v2893_v30, %v1271_v31 }
0x1140   :  { %1275 = vrot.lane.b32.xlu0 %v1273_v32, %s2959_s19 }
0x11ad   :  { %v1378_v55 = vpop.permute.xlu1 %1377 }
0x11ae   :  { %v1380_v33 = vadd.f32 %v1378_v55, %v205_v20 }
0x11b0   :  { %2894 = vtanh.f32 %v1380_v33 }
0x11b2   :  { %v1276_v35 = vpop.permute.xlu0 %1275 }
0x11b3   :  { %v1278_v36 = vadd.f32 %v1276_v35, %v1260_v17 }
0x11b5   :  { %2896 = vtanh.f32 %v1278_v36 }
0x11ba   :  { %v2895_v37 = vpop.eup %2894 }
0x11bb   :  { %v1382_v38 = vsub.f32 %v1180_v4, %v2895_v37 }
0x11bd   :  { %1384 = vrot.lane.b32.xlu1 %v1382_v38, %s2960_s20 }
0x11bf   :  { %v2897_v40 = vpop.eup %2896 }
0x11c0   :  { %v1280_v41 = vsub.f32 %v1078_v7, %v2897_v40 }
0x11c2   :  { %1282 = vrot.lane.b32.xlu0 %v1280_v41, %s2960_s20 }
0x122f   :  { %v1385_v42 = vpop.permute.xlu1 %1384 }
0x1230   :  { %v1387_v43 = vmul.f32 %v2891_v27, %v1385_v42 }
0x1232   :  { %1389 = vrot.lane.b32.xlu1 %v1387_v43, %s2961_s29 }
0x1234   :  { %v1283_v45 = vpop.permute.xlu0 %1282 }
0x1235   :  { %v1285_v46 = vmul.f32 %v2893_v30, %v1283_v45 }
0x1237   :  { %1287 = vrot.lane.b32.xlu0 %v1285_v46, %s2961_s29 }
0x12a4   :  { %v1390_v56 = vpop.permute.xlu1 %1389 }
0x12a5   :  { %v1392_v47 = vadd.f32 %v2895_v37, %v1390_v56 }
0x12a7   :  { %1394 = vrot.lane.b32.xlu0 %v1392_v47, %s2959_s19 }
0x12a9   :  { %v1288_v48 = vpop.permute.xlu0 %1287 }
0x12aa   :  { %v1290_v49 = vadd.f32 %v2897_v40, %v1288_v48 }
0x12ac   :  { %1398 = vrot.lane.b32.xlu1 %v1290_v49, %s2960_s20 }
0x1319   :  { %v1395_v51 = vpop.permute.xlu0 %1394 }
0x131a   :  { %2577 = vmatmul.mubr.msk.f32.vlgmr.msra.gmra.mrb[18].mxu0 %vm218_vm2, %v1395_v51 }
0x131b   :  { %2777 = vmatpush3.bf16.msra.mxu0 %v3113_v34  ;;  %2595 = vmatprep.mubr.msk.f32.mxu0 %vm2957_vm0, %v2958_v1 }
0x131c   :  { %2778 = vmatprep.subr.bf16.mxu0 %v2956_v0 }
0x131e   :  { %v1399_v52 = vpop.permute.xlu1 %1398 }
0x131f   :  { %v1401_v59 = vsel %vm218_vm2, %v1395_v51, %v1399_v52  ;;  %2780 = vmatpush3.bf16.msra.mxu0 %v3130_v39 }
0x1320   :  { %2566 = vmatmul.mubr.msk.f32.vlgmr.msra.gmra.mrb[12].mxu1 %vm341_vm3, %v1401_v59  ;;  %2781 = vmatprep.subr.bf16.mxu0 %v2956_v0 }
0x1321   :  { %2789 = vmatpush3.bf16.msra.mxu1 %v3056_v5  ;;  %2606 = vmatprep.mubr.msk.f32.mxu1 %vm2957_vm0, %v2958_v1 }
0x1322   :  { %2790 = vmatprep.subr.bf16.mxu1 %v2956_v0 }
0x1323   :  { %2783 = vmatpush3.bf16.msra.mxu0 %v3148_v44 }
0x1324   :  { %2784 = vmatprep.subr.bf16.mxu0 %v2956_v0 }
0x1325   :  { %2792 = vmatpush3.bf16.msra.mxu1 %v3076_v11  ;;  %v210_v11 = vadd.f32 %v3099_v18, %v3185_v58 }
0x1326   :  { %2793 = vmatprep.subr.bf16.mxu1 %v2956_v0 }
0x1327   :  { %2786 = vmatpush3.bf16.msra.mxu0 %v3164_v50 }
0x1328   :  { %2805 = vmatprep.subr.bf16.mxu0 %v2956_v0 }
0x13ed   :  { %v1571_v60 = vpop.f32.mrb[18].mxu0 }
0x13ee   :  { %v1582_v5 = vadd.f32 %v1571_v60, %v3092_v14  ;;  %v2578_v62 = vpop.f32.mrb[19].mxu0  ;;  %v1575_v3 = vadd.f32 %v1571_v60, %v210_v11 }
0x13f0   :  { %1584 = vrot.lane.b32.xlu1 %v1582_v5, %s2959_s19  ;;  %v2225_v4 = vmul.f32 -1.442695, %v1575_v3 }
0x13f2   :  { %2898 = vpow2.f32 %v2225_v4 }
0x13f3   :  { %v1471_v63 = vpop.f32.mrb[12].mxu1 }
0x13f4   :  { %v1472_v2 = vadd.f32 %v3209_v61, %v1471_v63  ;;  %v2567_v53 = vpop.f32.mrb[13].mxu1 }
0x13f6   :  { %1482 = vrot.lane.b32.xlu0 %v1472_v2, %s2961_s29  ;;  %v2223_v6 = vmul.f32 -1.442695, %v1472_v2 }
0x13f8   :  { %2900 = vpow2.f32 %v2223_v6 }
0x13fc   :  { %v2899_v7 = vpop.eup %2898 }
0x13fd   :  { %v1579_v8 = vadd.f32 1.0, %v2899_v7 }
0x13ff   :  { %2902 = vrcp.f32 %v1579_v8 }
0x1402   :  { %v2901_v9 = vpop.eup %2900 }
0x1403   :  { %v1478_v10 = vadd.f32 1.0, %v2901_v9 }
0x1405   :  { %2904 = vrcp.f32 %v1478_v10 }
0x1409   :  { %v2903_v13 = vpop.eup %2902 }
0x140f   :  { %v2905_v16 = vpop.eup %2904 }
0x1462   :  { %v1585_v15 = vpop.permute.xlu1 %1584 }
0x1463   :  { %v1587_v54 = vmul.f32 %v2903_v13, %v1585_v15 }
0x1465   :  { %1589 = vrot.lane.b32.xlu1 %v1587_v54, %s2959_s19 }
0x1468   :  { %v1483_v17 = vpop.permute.xlu0 %1482 }
0x1469   :  { %v1485_v19 = vmul.f32 %v2905_v16, %v1483_v17 }
0x146b   :  { %1487 = vrot.lane.b32.xlu0 %v1485_v19, %s2959_s19 }
0x14d7   :  { %v1590_v18 = vpop.permute.xlu1 %1589 }
0x14d8   :  { %v1592_v58 = vadd.f32 %v1590_v18, %v210_v11 }
0x14da   :  { %2906 = vtanh.f32 %v1592_v58 }
0x14dd   :  { %v1488_v20 = vpop.permute.xlu0 %1487 }
0x14de   :  { %v1490_v21 = vadd.f32 %v1488_v20, %v1472_v2 }
0x14e0   :  { %2908 = vtanh.f32 %v1490_v21 }
0x14e4   :  { %v2907_v22 = vpop.eup %2906 }
0x14e5   :  { %v1594_v23 = vsub.f32 %v1392_v47, %v2907_v22 }
0x14e7   :  { %1596 = vrot.lane.b32.xlu1 %v1594_v23, %s2960_s20 }
0x14ea   :  { %v2909_v24 = vpop.eup %2908 }
0x14eb   :  { %v1492_v12 = vsub.f32 %v1290_v49, %v2909_v24 }
0x14ed   :  { %1494 = vrot.lane.b32.xlu0 %v1492_v12, %s2960_s20 }
0x1559   :  { %v1597_v25 = vpop.permute.xlu1 %1596 }
0x155a   :  { %v1599_v26 = vmul.f32 %v2903_v13, %v1597_v25 }
0x155c   :  { %1601 = vrot.lane.b32.xlu1 %v1599_v26, %s2961_s29 }
0x155f   :  { %v1495_v27 = vpop.permute.xlu0 %1494 }
0x1560   :  { %v1497_v28 = vmul.f32 %v2905_v16, %v1495_v27 }
0x1562   :  { %1499 = vrot.lane.b32.xlu0 %v1497_v28, %s2961_s29  ;;  %v1928_v28 = vld [vmem:[%s3484_s7 + $0x8] sm:$0xff] }
0x15ce   :  { %v1602_v29 = vpop.permute.xlu1 %1601 }
0x15cf   :  { %v1604_v30 = vadd.f32 %v2907_v22, %v1602_v29  ;;  %v1929_v29 = vld [vmem:[%s3484_s7 + $0x10] sm:$0xff] }
0x15d1   :  { %1606 = vrot.lane.b32.xlu0 %v1604_v30, %s2959_s19 }
0x15d4   :  { %v1500_v31 = vpop.permute.xlu0 %1499 }
0x15d5   :  { %v1502_v32 = vadd.f32 %v2909_v24, %v1500_v31  ;;  %v1930_v31 = vld [vmem:[%s3484_s7 + $0x18] sm:$0xff] }
0x15d7   :  { %1610 = vrot.lane.b32.xlu1 %v1502_v32, %s2960_s20 }
0x1643   :  { %v1607_v55 = vpop.permute.xlu0 %1606 }
0x1644   :  { %2607 = vmatmul.mubr.msk.f32.vlgmr.msra.gmra.mrb[14].mxu1 %vm218_vm2, %v1607_v55 }
0x1645   :  { %2795 = vmatpush3.bf16.msra.mxu1 %v3113_v34  ;;  %2625 = vmatprep.mubr.msk.f32.mxu1 %vm2957_vm0, %v2958_v1 }
0x1646   :  { %2796 = vmatprep.subr.bf16.mxu1 %v2956_v0 }
0x1649   :  { %v1611_v33 = vpop.permute.xlu1 %1610  ;;  %2798 = vmatpush3.bf16.msra.mxu1 %v3130_v39 }
0x164a   :  { %v1613_v35 = vsel %vm218_vm2, %v1607_v55, %v1611_v33  ;;  %2799 = vmatprep.subr.bf16.mxu1 %v2956_v0 }
0x164b   :  { %2596 = vmatmul.mubr.msk.f32.vlgmr.msra.gmra.mrb[20].mxu0 %vm341_vm3, %v1613_v35 }
0x164c   :  { %2636 = vmatprep.mubr.msk.f32.mxu0 %vm2957_vm0, %v2958_v1 }
0x164d   :  { %2801 = vmatpush3.bf16.msra.mxu1 %v3148_v44  ;;  %v2928_v44 = vld [vmem:[%s3480_s3] ss:$0 sm:$0xff] }
0x164e   :  { %2802 = vmatprep.subr.bf16.mxu1 %v2956_v0 }
0x1651   :  { %2804 = vmatpush3.bf16.msra.mxu1 %v3164_v50  ;;  %v215_v50 = vadd.f32 %v2928_v44, %v3183_v57  ;;  %v2017_v44 = vld [vmem:[#allocation2 + $0x18] sm:$0xff] }
0x1652   :  { %2817 = vmatprep.subr.bf16.mxu1 %v2956_v0 }
0x1717   :  { %v1783_v34 = vpop.f32.mrb[14].mxu1 }
0x1718   :  { %v1794_v39 = vadd.f32 %v1783_v34, %v3092_v14  ;;  %v2608_v36 = vpop.f32.mrb[15].mxu1  ;;  %v1787_v41 = vadd.f32 %v1783_v34, %v215_v50 }
0x1719   :  { %v2015_v36 = vld [vmem:[#allocation2 + $0x8] sm:$0xff] }
0x171a   :  { %1796 = vrot.lane.b32.xlu1 %v1794_v39, %s2959_s19  ;;  %v2229_v42 = vmul.f32 -1.442695, %v1787_v41  ;;  %v2014_v39 = vld [vmem:[#allocation2] sm:$0xff] }
0x171b   :  { %v2099_v41 = vld [vmem:[%s3488_s11] sm:$0xff] }
0x171c   :  { %2910 = vpow2.f32 %v2229_v42  ;;  %v2100_v42 = vld [vmem:[%s3488_s11 + $0x8] sm:$0xff] }
0x171e   :  { %v1683_v37 = vpop.f32.mrb[20].mxu0 }
0x171f   :  { %v1684_v38 = vadd.f32 %v3209_v61, %v1683_v37  ;;  %v2597_v40 = vpop.f32.mrb[21].mxu0  ;;  %v2812_v37 = vpack.c.bf16 %v2015_v36, %v2014_v39 }
0x1720   :  { %v2016_v40 = vld [vmem:[#allocation2 + $0x10] sm:$0xff] }
0x1721   :  { %1694 = vrot.lane.b32.xlu0 %v1684_v38, %s2961_s29  ;;  %v2227_v43 = vmul.f32 -1.442695, %v1684_v38 }
0x1723   :  { %2912 = vpow2.f32 %v2227_v43  ;;  %v2818_v43 = vpack.c.bf16 %v2100_v42, %v2099_v41 }
0x1726   :  { %v2911_v14 = vpop.eup %2910 }
0x1727   :  { %v1791_v45 = vadd.f32 1.0, %v2911_v14 }
0x1729   :  { %2914 = vrcp.f32 %v1791_v45 }
0x172d   :  { %v2913_v46 = vpop.eup %2912 }
0x172e   :  { %v1690_v56 = vadd.f32 1.0, %v2913_v46 }
0x1730   :  { %2916 = vrcp.f32 %v1690_v56 }
0x1733   :  { %v2915_v47 = vpop.eup %2914 }
0x173a   :  { %v2917_v51 = vpop.eup %2916 }
0x178c   :  { %v1797_v48 = vpop.permute.xlu1 %1796 }
0x178d   :  { %v1799_v49 = vmul.f32 %v2915_v47, %v1797_v48  ;;  %v2102_v48 = vld [vmem:[%s3488_s11 + $0x18] sm:$0xff] }
0x178f   :  { %1801 = vrot.lane.b32.xlu1 %v1799_v49, %s2959_s19 }
0x1793   :  { %v1695_v52 = vpop.permute.xlu0 %1694 }
0x1794   :  { %v1697_v59 = vmul.f32 %v2917_v51, %v1695_v52 }
0x1796   :  { %1699 = vrot.lane.b32.xlu0 %v1697_v59, %s2959_s19 }
0x1801   :  { %v1802_v57 = vpop.permute.xlu1 %1801 }
0x1802   :  { %v1804_v60 = vadd.f32 %v1802_v57, %v215_v50  ;;  %v2815_v50 = vpack.c.bf16 %v2017_v44, %v2016_v40 }
0x1804   :  { %2918 = vtanh.f32 %v1804_v60  ;;  %v2236_v60 = vld [vmem:[%s3489_s12] ss:$0 sm:$0xff] }
0x1808   :  { %v1700_v5 = vpop.permute.xlu0 %1699 }
0x1809   :  { %v1702_v62 = vadd.f32 %v1700_v5, %v1684_v38 }
0x180b   :  { %2920 = vtanh.f32 %v1702_v62 }
0x180e   :  { %v2919_v63 = vpop.eup %2918 }
0x180f   :  { %v1806_v2 = vsub.f32 %v1604_v30, %v2919_v63 }
0x1811   :  { %1808 = vrot.lane.b32.xlu1 %v1806_v2, %s2960_s20 }
0x1815   :  { %v2921_v53 = vpop.eup %2920 }
0x1816   :  { %v1704_v11 = vsub.f32 %v1502_v32, %v2921_v53  ;;  %v2809_v32 = vpack.c.bf16 %v1930_v31, %v1929_v29 }
0x1818   :  { %1706 = vrot.lane.b32.xlu0 %v1704_v11, %s2960_s20 }
0x1883   :  { %v1809_v3 = vpop.permute.xlu1 %1808 }
0x1884   :  { %v1811_v4 = vmul.f32 %v2915_v47, %v1809_v3  ;;  %v2101_v47 = vld [vmem:[%s3488_s11 + $0x10] sm:$0xff] }
0x1885   :  { %v2821_v49 = vpack.c.bf16 %v2102_v48, %v2101_v47 }
0x1886   :  { %1813 = vrot.lane.b32.xlu1 %v1811_v4, %s2961_s29 }
0x188a   :  { %v1707_v6 = vpop.permute.xlu0 %1706 }
0x188b   :  { %v1709_v7 = vmul.f32 %v2917_v51, %v1707_v6 }
0x188d   :  { %1711 = vrot.lane.b32.xlu0 %v1709_v7, %s2961_s29 }
0x18f8   :  { %v1814_v8 = vpop.permute.xlu1 %1813 }
0x18f9   :  { %v1816_v9 = vadd.f32 %v2919_v63, %v1814_v8 }
0x18fb   :  { %1818 = vrot.lane.b32.xlu0 %v1816_v9, %s2959_s19 }
0x18ff   :  { %v1712_v10 = vpop.permute.xlu0 %1711 }
0x1900   :  { %v1714_v13 = vadd.f32 %v2921_v53, %v1712_v10 }
0x1902   :  { %1822 = vrot.lane.b32.xlu1 %v1714_v13, %s2960_s20 }
0x196d   :  { %v1819_v15 = vpop.permute.xlu0 %1818 }
0x1974   :  { %v1823_v54 = vpop.permute.xlu1 %1822 }
0x1975   :  { %v1825_v16 = vsel %vm218_vm2, %v1819_v15, %v1823_v54 }
0x1976   :  { %2626 = vmatmul.mubr.msk.f32.vlgmr.msra.gmra.mrb[16].mxu1 %vm341_vm3, %v1825_v16 }
0x1977   :  { %2658 = vmatprep.mubr.msk.f32.mxu1 %vm2957_vm0, %v2958_v1  ;;  %2819 = vmatpush3.bf16.msra.mxu1 %v2818_v43 }
0x1978   :  { %2820 = vmatprep.subr.bf16.mxu1 %v2956_v0 }
0x197b   :  { %2822 = vmatpush3.bf16.msra.mxu1 %v2821_v49 }
0x1a49   :  { %v1895_v17 = vpop.f32.mrb[16].mxu1 }
0x1a4a   :  { %v1896_v19 = vadd.f32 %v3209_v61, %v1895_v17  ;;  %v2627_v18 = vpop.f32.mrb[17].mxu1  ;;  %v1927_v61 = vld [vmem:[%s3484_s7] sm:$0xff] }
0x1a4b   :  { %v2806_v30 = vpack.c.bf16 %v1928_v28, %v1927_v61 }
0x1a4c   :  { %1906 = vrot.lane.b32.xlu0 %v1896_v19, %s2961_s29  ;;  %v2231_v58 = vmul.f32 -1.442695, %v1896_v19 }
0x1a4d   :  { %2807 = vmatpush3.bf16.msra.mxu0 %v2806_v30 }
0x1a4e   :  { %2922 = vpow2.f32 %v2231_v58  ;;  %2808 = vmatprep.subr.bf16.mxu0 %v2956_v0 }
0x1a51   :  { %2810 = vmatpush3.bf16.msra.mxu0 %v2809_v32 }
0x1a52   :  { %2811 = vmatprep.subr.bf16.mxu0 %v2956_v0 }
0x1a58   :  { %v2923_v20 = vpop.eup %2922 }
0x1a59   :  { %v1902_v21 = vadd.f32 1.0, %v2923_v20 }
0x1a5b   :  { %2924 = vrcp.f32 %v1902_v21 }
0x1a65   :  { %v2925_v22 = vpop.eup %2924 }
0x1abe   :  { %v1907_v23 = vpop.permute.xlu0 %1906 }
0x1abf   :  { %v1909_v24 = vmul.f32 %v2925_v22, %v1907_v23 }
0x1ac1   :  { %1911 = vrot.lane.b32.xlu1 %v1909_v24, %s2959_s19 }
0x1b33   :  { %v1912_v12 = vpop.permute.xlu1 %1911 }
0x1b34   :  { %v1914_v25 = vadd.f32 %v1912_v12, %v1896_v19 }
0x1b36   :  { %2926 = vtanh.f32 %v1914_v25 }
0x1b40   :  { %v2927_v26 = vpop.eup %2926 }
0x1b41   :  { %v1916_v27 = vsub.f32 %v1714_v13, %v2927_v26 }
0x1b43   :  { %1918 = vrot.lane.b32.xlu0 %v1916_v27, %s2960_s20 }
0x1bb5   :  { %v1919_v55 = vpop.permute.xlu0 %1918 }
0x1bb6   :  { %v1921_v33 = vmul.f32 %v2925_v22, %v1919_v55 }
0x1bb8   :  { %1923 = vrot.lane.b32.xlu1 %v1921_v33, %s2961_s29 }
0x1c2a   :  { %v1924_v35 = vpop.permute.xlu1 %1923 }
0x1c2b   :  { %v1926_v34 = vadd.f32 %v2927_v26, %v1924_v35 }
0x1c2d   :  { %1939 = vrot.lane.b32.xlu0 %v1926_v34, %s2959_s19 }
0x1c9f   :  { %v1940_v38 = vpop.permute.xlu0 %1939 }
0x1ca0   :  { %2637 = vmatmul.mubr.msk.f32.vlgmr.msra.gmra.mrb[22].mxu0 %vm218_vm2, %v1940_v38 }
0x1ca1   :  { %2813 = vmatpush3.bf16.msra.mxu0 %v2812_v37  ;;  %2647 = vmatprep.mubr.msk.f32.mxu0 %vm2957_vm0, %v2958_v1  ;;  %v2232_v1 = vld [vmem:[%s3485_s8] ss:$0 sm:$0xff] }
0x1ca2   :  { %2814 = vmatprep.subr.bf16.mxu0 %v2956_v0  ;;  %v2234_v0 = vld [vmem:[%s3487_s10] ss:$0 sm:$0xff] }
0x1ca5   :  { %2816 = vmatpush3.bf16.msra.mxu0 %v2815_v50 }
0x1d73   :  { %v2009_v14 = vpop.f32.mrb[22].mxu0 }
0x1d74   :  { %v2010_v45 = vadd.f32 %v2232_v1, %v2009_v14  ;;  %v2638_v46 = vpop.f32.mrb[23].mxu0 }
0x1d76   :  { %v2013_v56 = vmax.f32 %v2010_v45, 0.0 }
0x1d78   :  { %2648 = vmatmul.mubr.msk.f32.vlgmr.msra.gmra.mrb[24].mxu0 %vm218_vm2, %v2013_v56 }
0x1e4b   :  { %v2094_v51 = vpop.f32.mrb[24].mxu0 }
0x1e4c   :  { %v2095_v52 = vadd.f32 %v2234_v0, %v2094_v51  ;;  %v2649_v59 = vpop.f32.mrb[25].mxu0 }
0x1e4e   :  { %v2098_v57 = vmax.f32 %v2095_v52, 0.0 }
0x1e50   :  { %2659 = vmatmul.mubr.msk.f32.vlgmr.msra.gmra.mrb[18].mxu1 %vm218_vm2, %v2098_v57 }
0x1f23   :  { %v2179_v5 = vpop.f32.mrb[18].mxu1 }
0x1f24   :  { %v2180_v62 = vadd.f32 %v2236_v60, %v2179_v5  ;;  %v2660_v63 = vpop.f32.mrb[19].mxu1 }
0x1f26   :  { %2184 = vst.msk [vmem:[%s3490_s13] sm:$0xff] %vm2183_vm4, %v2180_v62 }
0x1f27   :  { %2189 = vsyncpa [#allocation3], 1 }

</bundles_post_ra>
